<compile_context>
chip_gen: v6e
topology: v6e:2x2x1
jax: 0.10.0
libtpu: 0.0.40
codegen_flags: <defaults>
</compile_context>

<pallas_src>
import functools

import jax
import jax.numpy as jnp
from jax.experimental import pallas as pl
from jax.experimental.pallas import tpu as pltpu

_PREC = jax.lax.Precision.HIGHEST  # used only by the plain-JAX reference


# ----------------------------- kernel helpers -------------------------------
def _layernorm(x, w, b, eps=1e-5):
    # f32 in, f32 out
    mu = jnp.mean(x, axis=-1, keepdims=True)
    xc = x - mu
    var = jnp.mean(xc * xc, axis=-1, keepdims=True)
    return xc * jax.lax.rsqrt(var + eps) * w + b


def _mm(a_bf16, w_bf16):
    # (M, K) @ (K, N): bf16 operands, f32 accumulation on the MXU.
    return jnp.dot(a_bf16, w_bf16, preferred_element_type=jnp.float32)


def _softmax(x):
    # f32 numerics; the divide moves to the EUP via the approx reciprocal
    # (~2^-12 relative bias -- fine for inference at the stated tolerance).
    m = jnp.max(x, axis=-1, keepdims=True)
    e = jnp.exp(x - m)
    denom = jnp.sum(e, axis=-1, keepdims=True)
    return e * pl.reciprocal(denom, approx=True)


def _gelu(x):
    # exact GELU (erf form), matching torch.nn.GELU default; kept in f32.
    return 0.5 * x * (1.0 + jax.lax.erf(x * jnp.float32(0.7071067811865476)))


# --------------------------------- kernel -----------------------------------
def encoder_kernel(h_ref,
                   ln1w_ref, ln1b_ref,
                   qkvw_ref,
                   projw_ref, projb_ref,
                   ln2w_ref, ln2b_ref,
                   fc1w_ref, fc1b_ref, fc2w_ref, fc2b_ref,
                   normw_ref, normb_ref,
                   out_ref, state,
                   *, num_heads):
    TB, N, C = state.shape
    H = num_heads
    Dh = C // H
    scale = jnp.float32(Dh ** -0.5)

    layer = pl.program_id(1)

    @pl.when(layer == 0)
    def _():
        state[...] = h_ref[...].astype(jnp.float32)

    x = state[...]                                           # (TB, N, C) f32

    # ------------- attention branch: x = x + Proj(MHSA(LN1(x))) -------------
    xn = _layernorm(x, ln1w_ref[...], ln1b_ref[...])         # f32
    xb = xn.reshape(TB * N, C).astype(jnp.bfloat16)          # MXU operand

    # Fused QKV: one (TB*N, C) @ (C, 3C) matmul, lane-aligned slices at C, 2C.
    qkv = _mm(xb, qkvw_ref[...])                             # (TB*N, 3C) f32
    # Scale applied once to q (exact, f32) instead of per-head on the scores.
    q = (qkv[:, 0 * C:1 * C] * scale).astype(jnp.bfloat16).reshape(TB, N, C)
    k = qkv[:, 1 * C:2 * C].astype(jnp.bfloat16).reshape(TB, N, C)
    v = qkv[:, 2 * C:3 * C].astype(jnp.bfloat16).reshape(TB, N, C)

    # Per-head attention (static unroll, H small), heads concatenated once so
    # the output projection runs as a single full-K (C-deep) MXU matmul.
    o_heads = []
    for hh in range(H):
        sl = slice(hh * Dh, (hh + 1) * Dh)
        s = jnp.einsum('bnd,bmd->bnm', q[:, :, sl], k[:, :, sl],
                       preferred_element_type=jnp.float32)   # (TB, N, N) f32
        p = _softmax(s)
        o = jnp.einsum('bnm,bmd->bnd', p.astype(jnp.bfloat16), v[:, :, sl],
                       preferred_element_type=jnp.float32)   # (TB, N, Dh) f32
        o_heads.append(o.astype(jnp.bfloat16))
    o_all = jnp.concatenate(o_heads, axis=-1).reshape(TB * N, C)  # bf16

    attn = _mm(o_all, projw_ref[...]) + projb_ref[...]       # (TB*N, C) f32
    x = x + attn.reshape(TB, N, C)

    # ---------------- MLP branch: x = x + FC2(GELU(FC1(LN2(x)))) ------------
    xn = _layernorm(x, ln2w_ref[...], ln2b_ref[...])
    hb = xn.reshape(TB * N, C).astype(jnp.bfloat16)
    # GELU->bf16 cast fused: the f32 hidden never coexists with its bf16 copy.
    hid = _gelu(_mm(hb, fc1w_ref[...]) + fc1b_ref[...]).astype(jnp.bfloat16)
    mlp = _mm(hid, fc2w_ref[...]) + fc2b_ref[...]             # (TB*N, C) f32
    x = x + mlp.reshape(TB, N, C)

    state[...] = x

    @pl.when(layer == pl.num_programs(1) - 1)
    def _():
        out_ref[...] = _layernorm(x, normw_ref[...],
                                  normb_ref[...]).astype(out_ref.dtype)


# -------------------------------- wrapper ------------------------------------
def _pick_block_b(B, cap=8):
    # Largest divisor of B that is <= cap while keeping >= 2 batch tiles so
    # the "parallel" axis can shard across v7x's two TensorCores.
    best = 1
    for cand in range(1, B + 1):
        if B % cand == 0 and cand <= cap and (B // cand >= 2 or B == cand == 1):
            best = max(best, cand)
    return best


def _vmem_limit_bytes():
    # Generation-aware VMEM scoped limit: 75% of physical, capped at 100 MiB
    # (v5e/v6e: 128 MiB physical -> ~96-100 MiB; v7x: 64 MiB -> ~48 MiB).
    cap = 64 * 1024 * 1024
    try:
        info = pltpu.get_tpu_info()
        cap = int(getattr(info, "vmem_capacity_bytes", cap))
    except Exception:
        pass
    return int(min((cap * 3) // 4, 100 * 1024 * 1024))


def transformer_encoder(h, params, num_heads, *, block_b=None):
    """Single-pass transformer encoder.

    block_b: batch tile.  For production ViT sizes choose it so that
    block_b * N >~ 600 on v6e/v7x (>~ 250 on v5e) to amortize the per-layer
    bf16 weight stream and stay MXU-bound, while keeping B // block_b >= 2.
    """
    B, N, C = h.shape
    L = params['qkv_w'].shape[0]
    Ch = params['fc1_w'].shape[1]
    H = num_heads
    assert C % H == 0

    if block_b is None:
        block_b = _pick_block_b(B)
    assert B % block_b == 0

    # ---- one-time host-side weight prep: (out,in) -> (in,out), bf16 ----
    def to_in_out(w):                       # (L, out, in) -> (L, in, out) bf16
        return jnp.swapaxes(w, 1, 2).astype(jnp.bfloat16)

    qkv_w = to_in_out(params['qkv_w'])                       # (L, C, 3C)
    proj_w = to_in_out(params['proj_w'])                     # (L, C, C)
    fc1_w = to_in_out(params['fc1_w'])                       # (L, C, Ch)
    fc2_w = to_in_out(params['fc2_w'])                       # (L, Ch, C)

    def per_layer(tail):
        # stacked param (L, *tail): squeeze the layer dim, full block otherwise
        return pl.BlockSpec((None,) + tail,
                            lambda b, l: (l,) + (0,) * len(tail))

    io_spec = pl.BlockSpec((block_b, N, C), lambda b, l: (b, 0, 0))

    grid_spec = pltpu.PrefetchScalarGridSpec(
        num_scalar_prefetch=0,
        grid=(B // block_b, L),
        in_specs=[
            io_spec,                                   # h
            per_layer((1, C)), per_layer((1, C)),      # ln1 w, b        (f32)
            per_layer((C, 3 * C)),                     # fused qkv_w     (bf16)
            per_layer((C, C)),                         # proj_w          (bf16)
            per_layer((1, C)),                         # proj_b          (f32)
            per_layer((1, C)), per_layer((1, C)),      # ln2 w, b
            per_layer((C, Ch)), per_layer((1, Ch)),    # fc1 w, b
            per_layer((Ch, C)), per_layer((1, C)),     # fc2 w, b
            pl.BlockSpec((1, C), lambda b, l: (0, 0)),  # final norm_w
            pl.BlockSpec((1, C), lambda b, l: (0, 0)),  # final norm_b
        ],
        out_specs=io_spec,
        scratch_shapes=[pltpu.VMEM((block_b, N, C), jnp.float32)],
    )

    # Advisory cost estimate for XLA scheduling around the custom call.
    flops_per_tok_layer = 2 * (4 * C * C + 2 * C * Ch) + 4 * N * C
    flops = B * N * L * flops_per_tok_layer
    transc = B * N * L * (H * N + Ch)                        # exp + erf
    weight_bytes = (B // block_b) * L * (4 * C * C + 2 * C * Ch) * 2  # bf16
    act_bytes = 2 * B * N * C * 4
    cost = pl.CostEstimate(flops=int(flops), transcendentals=int(transc),
                           bytes_accessed=int(weight_bytes + act_bytes))

    kernel = functools.partial(encoder_kernel, num_heads=num_heads)
    return pl.pallas_call(
        kernel,
        out_shape=jax.ShapeDtypeStruct((B, N, C), jnp.float32),
        grid_spec=grid_spec,
        cost_estimate=cost,
        compiler_params=pltpu.CompilerParams(
            # batch tiles are independent -> parallel (megacore / v7x 2 TCs);
            # layer axis carries state -> arbitrary (kept last, per convention)
            dimension_semantics=("parallel", "arbitrary"),
            vmem_limit_bytes=_vmem_limit_bytes(),
        ),
    )(h,
      params['ln1_w'], params['ln1_b'],
      qkv_w,
      proj_w, params['proj_b'],
      params['ln2_w'], params['ln2_b'],
      fc1_w, params['fc1_b'], fc2_w, params['fc2_b'],
      params['norm_w'], params['norm_b'])


# --------------------------- plain-JAX reference ------------------------------
def reference_encoder(h, params, num_heads):
    B, N, C = h.shape
    L = params['qkv_w'].shape[0]
    H = num_heads
    Dh = C // H
    scale = Dh ** -0.5

    def ln(x, w, b):
        mu = jnp.mean(x, axis=-1, keepdims=True)
        var = jnp.mean((x - mu) ** 2, axis=-1, keepdims=True)
        return (x - mu) / jnp.sqrt(var + 1e-5) * w + b

    x = h.astype(jnp.float32)
    for l in range(L):
        xn = ln(x, params['ln1_w'][l, 0], params['ln1_b'][l, 0])
        qkv = jnp.einsum('bnc,dc->bnd', xn, params['qkv_w'][l], precision=_PREC)
        q, k, v = jnp.split(qkv, 3, axis=-1)
        q = q.reshape(B, N, H, Dh).transpose(0, 2, 1, 3)
        k = k.reshape(B, N, H, Dh).transpose(0, 2, 1, 3)
        v = v.reshape(B, N, H, Dh).transpose(0, 2, 1, 3)
        s = jnp.einsum('bhnd,bhmd->bhnm', q, k, precision=_PREC) * scale
        p = jax.nn.softmax(s, axis=-1)
        a = jnp.einsum('bhnm,bhmd->bhnd', p, v, precision=_PREC)
        a = a.transpose(0, 2, 1, 3).reshape(B, N, C)
        a = jnp.einsum('bnc,dc->bnd', a, params['proj_w'][l],
                       precision=_PREC) + params['proj_b'][l, 0]
        x = x + a

        xn = ln(x, params['ln2_w'][l, 0], params['ln2_b'][l, 0])
        hid = jnp.einsum('bnc,dc->bnd', xn, params['fc1_w'][l],
                         precision=_PREC) + params['fc1_b'][l, 0]
        hid = 0.5 * hid * (1.0 + jax.lax.erf(hid / jnp.sqrt(2.0)))
        m = jnp.einsum('bnd,cd->bnc', hid, params['fc2_w'][l],
                       precision=_PREC) + params['fc2_b'][l, 0]
        x = x + m

    return ln(x, params['norm_w'][0], params['norm_b'][0])


# ------------------------------- param init -----------------------------------
def init_params(key, num_layers, embed_dim, mlp_hidden):
    # PyTorch nn.Linear layout: weight is (out_features, in_features)
    L, C, Ch = num_layers, embed_dim, mlp_hidden
    ks = jax.random.split(key, 8)

    def w(k, shape):
        return jax.random.normal(k, shape, jnp.float32) * 0.02

    return {
        'ln1_w': jnp.ones((L, 1, C), jnp.float32),
        'ln1_b': jnp.zeros((L, 1, C), jnp.float32),
        'qkv_w': w(ks[0], (L, 3 * C, C)),
        'proj_w': w(ks[1], (L, C, C)),
        'proj_b': w(ks[2], (L, 1, C)),
        'ln2_w': jnp.ones((L, 1, C), jnp.float32),
        'ln2_b': jnp.zeros((L, 1, C), jnp.float32),
        'fc1_w': w(ks[3], (L, Ch, C)),
        'fc1_b': w(ks[4], (L, 1, Ch)),
        'fc2_w': w(ks[5], (L, C, Ch)),
        'fc2_b': w(ks[6], (L, 1, C)),
        'norm_w': jnp.ones((1, C), jnp.float32),
        'norm_b': jnp.zeros((1, C), jnp.float32),
    }


if __name__ == "__main__":
    B, N, C = 2, 8, 32          # batch, seq, embed_dim (small test shapes)
    num_heads = 4
    num_layers = 2              # "numbers" in the PyTorch module
    mlp_ratio = 4.0
    Ch = int(C * mlp_ratio)

    key = jax.random.PRNGKey(0)
    kx, kp = jax.random.split(key)
    h = jax.random.normal(kx, (B, N, C), jnp.float32)
    params = init_params(kp, num_layers, C, Ch)

    out = transformer_encoder(h, params, num_heads)
    out = jax.block_until_ready(out)

    ref = jax.block_until_ready(reference_encoder(h, params, num_heads))
    assert out.shape == (B, N, C)
    # bf16 MXU operands + approx-reciprocal softmax vs. an f32 HIGHEST reference:
    # tolerance loosened accordingly (f32 accumulation/LN/residuals keep the
    # error well inside this bound).
    max_err = float(jnp.max(jnp.abs(out - ref)))
    assert jnp.allclose(out, ref, rtol=3e-2, atol=3e-2), max_err

    print("KERNEL_OK")
</pallas_src>

<mosaic_0001>
module attributes {stable_mosaic.version = 11 : i64} {
  func.func @encoder_kernel(%arg0: i32, %arg1: i32, %arg2: memref<1x8x32xf32, #tpu.memory_space<vmem>>, %arg3: memref<1x1x32xf32, #tpu.memory_space<vmem>>, %arg4: memref<1x1x32xf32, #tpu.memory_space<vmem>>, %arg5: memref<1x32x96xbf16, #tpu.memory_space<vmem>>, %arg6: memref<1x32x32xbf16, #tpu.memory_space<vmem>>, %arg7: memref<1x1x32xf32, #tpu.memory_space<vmem>>, %arg8: memref<1x1x32xf32, #tpu.memory_space<vmem>>, %arg9: memref<1x1x32xf32, #tpu.memory_space<vmem>>, %arg10: memref<1x32x128xbf16, #tpu.memory_space<vmem>>, %arg11: memref<1x1x128xf32, #tpu.memory_space<vmem>>, %arg12: memref<1x128x32xbf16, #tpu.memory_space<vmem>>, %arg13: memref<1x1x32xf32, #tpu.memory_space<vmem>>, %arg14: memref<1x32xf32, #tpu.memory_space<vmem>>, %arg15: memref<1x32xf32, #tpu.memory_space<vmem>>, %arg16: memref<1x8x32xf32, #tpu.memory_space<vmem>>, %arg17: memref<1x8x32xf32, #tpu.memory_space<vmem>>) attributes {dimension_semantics = [#tpu.dimension_semantics<parallel>, #tpu.dimension_semantics<arbitrary>], iteration_bounds = array<i64: 2, 2>, scalar_prefetch = 0 : i64, scratch_operands = 1 : i64, tpu.core_type = #tpu.core_type<tc>, window_params = [{transform_indices = @transform_0, window_bounds = array<i64: 1, 8, 32>}, {transform_indices = @transform_1, window_bounds = array<i64: 1, 1, 32>}, {transform_indices = @transform_2, window_bounds = array<i64: 1, 1, 32>}, {transform_indices = @transform_3, window_bounds = array<i64: 1, 32, 96>}, {transform_indices = @transform_4, window_bounds = array<i64: 1, 32, 32>}, {transform_indices = @transform_5, window_bounds = array<i64: 1, 1, 32>}, {transform_indices = @transform_6, window_bounds = array<i64: 1, 1, 32>}, {transform_indices = @transform_7, window_bounds = array<i64: 1, 1, 32>}, {transform_indices = @transform_8, window_bounds = array<i64: 1, 32, 128>}, {transform_indices = @transform_9, window_bounds = array<i64: 1, 1, 128>}, {transform_indices = @transform_10, window_bounds = array<i64: 1, 128, 32>}, {transform_indices = @transform_11, window_bounds = array<i64: 1, 1, 32>}, {pipeline_mode = #tpu.pipeline_mode<synchronous>, transform_indices = @transform_12, window_bounds = array<i64: 1, 32>}, {pipeline_mode = #tpu.pipeline_mode<synchronous>, transform_indices = @transform_13, window_bounds = array<i64: 1, 32>}, {transform_indices = @transform_14, window_bounds = array<i64: 1, 8, 32>}]} {
    %c0_i32 = arith.constant 0 : i32
    %0 = arith.cmpi eq, %arg1, %c0_i32 : i32
    %1 = arith.extui %0 : i1 to i32
    %c0_i32_0 = arith.constant 0 : i32
    %2 = arith.cmpi ne, %1, %c0_i32_0 : i32
    scf.if %2 {
      %c0_73 = arith.constant 0 : index
      %c0_74 = arith.constant 0 : index
      %c0_75 = arith.constant 0 : index
      %182 = vector.load %arg2[%c0_73, %c0_74, %c0_75] : memref<1x8x32xf32, #tpu.memory_space<vmem>>, vector<1x8x32xf32>
      %c0_76 = arith.constant 0 : index
      %c0_77 = arith.constant 0 : index
      %c0_78 = arith.constant 0 : index
      %183 = vector.load %arg17[%c0_76, %c0_77, %c0_78] : memref<1x8x32xf32, #tpu.memory_space<vmem>>, vector<1x8x32xf32>
      tpu.vector_store %arg17[%c0_76, %c0_77, %c0_78], %182 {strides = array<i32>} : memref<1x8x32xf32, #tpu.memory_space<vmem>>, vector<1x8x32xf32>,
    } else {
    }
    %c0 = arith.constant 0 : index
    %c0_1 = arith.constant 0 : index
    %c0_2 = arith.constant 0 : index
    %3 = vector.load %arg17[%c0, %c0_1, %c0_2] : memref<1x8x32xf32, #tpu.memory_space<vmem>>, vector<1x8x32xf32>
    %c0_3 = arith.constant 0 : index
    %c0_4 = arith.constant 0 : index
    %c0_5 = arith.constant 0 : index
    %4 = vector.load %arg3[%c0_3, %c0_4, %c0_5] : memref<1x1x32xf32, #tpu.memory_space<vmem>>, vector<1x1x32xf32>
    %5 = vector.shape_cast %4 : vector<1x1x32xf32> to vector<1x32xf32>
    %c0_6 = arith.constant 0 : index
    %c0_7 = arith.constant 0 : index
    %c0_8 = arith.constant 0 : index
    %6 = vector.load %arg4[%c0_6, %c0_7, %c0_8] : memref<1x1x32xf32, #tpu.memory_space<vmem>>, vector<1x1x32xf32>
    %7 = vector.shape_cast %6 : vector<1x1x32xf32> to vector<1x32xf32>
    %cst = arith.constant dense<0.000000e+00> : vector<1x8xf32>
    %8 = vector.multi_reduction <add>, %3, %cst [2] : vector<1x8x32xf32> to vector<1x8xf32>
    %9 = vector.shape_cast %8 : vector<1x8xf32> to vector<1x8x1xf32>
    %cst_9 = arith.constant 3.200000e+01 : f32
    %10 = vector.broadcast %cst_9 : f32 to vector<1x8x1xf32>
    %11 = arith.divf %9, %10 : vector<1x8x1xf32>
    %12 = vector.broadcast %11 : vector<1x8x1xf32> to vector<1x8x32xf32>
    %13 = arith.subf %3, %12 : vector<1x8x32xf32>
    %14 = arith.mulf %13, %13 : vector<1x8x32xf32>
    %cst_10 = arith.constant dense<0.000000e+00> : vector<1x8xf32>
    %15 = vector.multi_reduction <add>, %14, %cst_10 [2] : vector<1x8x32xf32> to vector<1x8xf32>
    %16 = vector.shape_cast %15 : vector<1x8xf32> to vector<1x8x1xf32>
    %cst_11 = arith.constant 3.200000e+01 : f32
    %17 = vector.broadcast %cst_11 : f32 to vector<1x8x1xf32>
    %18 = arith.divf %16, %17 : vector<1x8x1xf32>
    %cst_12 = arith.constant 9.99999974E-6 : f32
    %19 = vector.broadcast %cst_12 : f32 to vector<1x8x1xf32>
    %20 = arith.addf %18, %19 : vector<1x8x1xf32>
    %21 = math.rsqrt %20 : vector<1x8x1xf32>
    %22 = vector.broadcast %21 : vector<1x8x1xf32> to vector<1x8x32xf32>
    %23 = arith.mulf %13, %22 : vector<1x8x32xf32>
    %24 = vector.shape_cast %5 : vector<1x32xf32> to vector<1x1x32xf32>
    %25 = vector.broadcast %24 : vector<1x1x32xf32> to vector<1x8x32xf32>
    %26 = arith.mulf %23, %25 : vector<1x8x32xf32>
    %27 = vector.shape_cast %7 : vector<1x32xf32> to vector<1x1x32xf32>
    %28 = vector.broadcast %27 : vector<1x1x32xf32> to vector<1x8x32xf32>
    %29 = arith.addf %26, %28 : vector<1x8x32xf32>
    %30 = vector.shape_cast %29 : vector<1x8x32xf32> to vector<8x32xf32>
    %31 = arith.truncf %30 : vector<8x32xf32> to vector<8x32xbf16>
    %c0_13 = arith.constant 0 : index
    %c0_14 = arith.constant 0 : index
    %c0_15 = arith.constant 0 : index
    %32 = vector.load %arg5[%c0_13, %c0_14, %c0_15] : memref<1x32x96xbf16, #tpu.memory_space<vmem>>, vector<1x32x96xbf16>
    %33 = vector.shape_cast %32 : vector<1x32x96xbf16> to vector<32x96xbf16>
    %cst_16 = arith.constant dense<0.000000e+00> : vector<8x96xf32>
    %34 = tpu.matmul %31, %33, %cst_16 {dimension_numbers = #tpu.dot_dimension_numbers<[1], [0], [0], [1], [0, 0, 1, 1], [], []>} : vector<8x32xbf16>, vector<32x96xbf16>, vector<8x96xf32> -> vector<8x96xf32>
    %35 = vector.extract_strided_slice %34 {offsets = [0, 0], sizes = [8, 32], strides = [1, 1]} : vector<8x96xf32> to vector<8x32xf32>
    %cst_17 = arith.constant 0.353553385 : f32
    %36 = vector.broadcast %cst_17 : f32 to vector<8x32xf32>
    %37 = arith.mulf %35, %36 : vector<8x32xf32>
    %38 = arith.truncf %37 : vector<8x32xf32> to vector<8x32xbf16>
    %39 = vector.shape_cast %38 : vector<8x32xbf16> to vector<1x8x32xbf16>
    %40 = vector.extract_strided_slice %34 {offsets = [0, 32], sizes = [8, 32], strides = [1, 1]} : vector<8x96xf32> to vector<8x32xf32>
    %41 = arith.truncf %40 : vector<8x32xf32> to vector<8x32xbf16>
    %42 = vector.shape_cast %41 : vector<8x32xbf16> to vector<1x8x32xbf16>
    %43 = vector.extract_strided_slice %34 {offsets = [0, 64], sizes = [8, 32], strides = [1, 1]} : vector<8x96xf32> to vector<8x32xf32>
    %44 = arith.truncf %43 : vector<8x32xf32> to vector<8x32xbf16>
    %45 = vector.shape_cast %44 : vector<8x32xbf16> to vector<1x8x32xbf16>
    %46 = vector.extract_strided_slice %39 {offsets = [0, 0, 0], sizes = [1, 8, 8], strides = [1, 1, 1]} : vector<1x8x32xbf16> to vector<1x8x8xbf16>
    %47 = vector.extract_strided_slice %42 {offsets = [0, 0, 0], sizes = [1, 8, 8], strides = [1, 1, 1]} : vector<1x8x32xbf16> to vector<1x8x8xbf16>
    "tpu.trace_start"() <{level = 10 : i32, message = "bnd,bmd->bnm"}> : () -> ()
    %cst_18 = arith.constant dense<0.000000e+00> : vector<1x8x8xf32>
    %48 = tpu.matmul %46, %47, %cst_18 {dimension_numbers = #tpu.dot_dimension_numbers<[2], [2], [1], [1], [0, 0, 0, 1, 1, 1], [0], [0]>} : vector<1x8x8xbf16>, vector<1x8x8xbf16>, vector<1x8x8xf32> -> vector<1x8x8xf32>
    "tpu.trace_stop"() : () -> ()
    %cst_19 = arith.constant dense<0xFF800000> : vector<1x8xf32>
    %49 = vector.multi_reduction <maximumf>, %48, %cst_19 [2] : vector<1x8x8xf32> to vector<1x8xf32>
    %50 = vector.shape_cast %49 : vector<1x8xf32> to vector<1x8x1xf32>
    %51 = vector.broadcast %50 : vector<1x8x1xf32> to vector<1x8x8xf32>
    %52 = arith.subf %48, %51 : vector<1x8x8xf32>
    %53 = math.exp %52 : vector<1x8x8xf32>
    %cst_20 = arith.constant dense<0.000000e+00> : vector<1x8xf32>
    %54 = vector.multi_reduction <add>, %53, %cst_20 [2] : vector<1x8x8xf32> to vector<1x8xf32>
    %55 = vector.shape_cast %54 : vector<1x8xf32> to vector<1x8x1xf32>
    %56 = tpu.reciprocal %55 {approx = true} : vector<1x8x1xf32> -> vector<1x8x1xf32>
    %57 = vector.broadcast %56 : vector<1x8x1xf32> to vector<1x8x8xf32>
    %58 = arith.mulf %53, %57 : vector<1x8x8xf32>
    %59 = arith.truncf %58 : vector<1x8x8xf32> to vector<1x8x8xbf16>
    %60 = vector.extract_strided_slice %45 {offsets = [0, 0, 0], sizes = [1, 8, 8], strides = [1, 1, 1]} : vector<1x8x32xbf16> to vector<1x8x8xbf16>
    "tpu.trace_start"() <{level = 10 : i32, message = "bnm,bmd->bnd"}> : () -> ()
    %cst_21 = arith.constant dense<0.000000e+00> : vector<1x8x8xf32>
    %61 = tpu.matmul %59, %60, %cst_21 {dimension_numbers = #tpu.dot_dimension_numbers<[2], [1], [1], [2], [0, 0, 0, 1, 1, 2], [0], [0]>} : vector<1x8x8xbf16>, vector<1x8x8xbf16>, vector<1x8x8xf32> -> vector<1x8x8xf32>
    "tpu.trace_stop"() : () -> ()
    %62 = arith.truncf %61 : vector<1x8x8xf32> to vector<1x8x8xbf16>
    %63 = vector.extract_strided_slice %39 {offsets = [0, 0, 8], sizes = [1, 8, 8], strides = [1, 1, 1]} : vector<1x8x32xbf16> to vector<1x8x8xbf16>
    %64 = vector.extract_strided_slice %42 {offsets = [0, 0, 8], sizes = [1, 8, 8], strides = [1, 1, 1]} : vector<1x8x32xbf16> to vector<1x8x8xbf16>
    "tpu.trace_start"() <{level = 10 : i32, message = "bnd,bmd->bnm"}> : () -> ()
    %cst_22 = arith.constant dense<0.000000e+00> : vector<1x8x8xf32>
    %65 = tpu.matmul %63, %64, %cst_22 {dimension_numbers = #tpu.dot_dimension_numbers<[2], [2], [1], [1], [0, 0, 0, 1, 1, 1], [0], [0]>} : vector<1x8x8xbf16>, vector<1x8x8xbf16>, vector<1x8x8xf32> -> vector<1x8x8xf32>
    "tpu.trace_stop"() : () -> ()
    %cst_23 = arith.constant dense<0xFF800000> : vector<1x8xf32>
    %66 = vector.multi_reduction <maximumf>, %65, %cst_23 [2] : vector<1x8x8xf32> to vector<1x8xf32>
    %67 = vector.shape_cast %66 : vector<1x8xf32> to vector<1x8x1xf32>
    %68 = vector.broadcast %67 : vector<1x8x1xf32> to vector<1x8x8xf32>
    %69 = arith.subf %65, %68 : vector<1x8x8xf32>
    %70 = math.exp %69 : vector<1x8x8xf32>
    %cst_24 = arith.constant dense<0.000000e+00> : vector<1x8xf32>
    %71 = vector.multi_reduction <add>, %70, %cst_24 [2] : vector<1x8x8xf32> to vector<1x8xf32>
    %72 = vector.shape_cast %71 : vector<1x8xf32> to vector<1x8x1xf32>
    %73 = tpu.reciprocal %72 {approx = true} : vector<1x8x1xf32> -> vector<1x8x1xf32>
    %74 = vector.broadcast %73 : vector<1x8x1xf32> to vector<1x8x8xf32>
    %75 = arith.mulf %70, %74 : vector<1x8x8xf32>
    %76 = arith.truncf %75 : vector<1x8x8xf32> to vector<1x8x8xbf16>
    %77 = vector.extract_strided_slice %45 {offsets = [0, 0, 8], sizes = [1, 8, 8], strides = [1, 1, 1]} : vector<1x8x32xbf16> to vector<1x8x8xbf16>
    "tpu.trace_start"() <{level = 10 : i32, message = "bnm,bmd->bnd"}> : () -> ()
    %cst_25 = arith.constant dense<0.000000e+00> : vector<1x8x8xf32>
    %78 = tpu.matmul %76, %77, %cst_25 {dimension_numbers = #tpu.dot_dimension_numbers<[2], [1], [1], [2], [0, 0, 0, 1, 1, 2], [0], [0]>} : vector<1x8x8xbf16>, vector<1x8x8xbf16>, vector<1x8x8xf32> -> vector<1x8x8xf32>
    "tpu.trace_stop"() : () -> ()
    %79 = arith.truncf %78 : vector<1x8x8xf32> to vector<1x8x8xbf16>
    %80 = vector.extract_strided_slice %39 {offsets = [0, 0, 16], sizes = [1, 8, 8], strides = [1, 1, 1]} : vector<1x8x32xbf16> to vector<1x8x8xbf16>
    %81 = vector.extract_strided_slice %42 {offsets = [0, 0, 16], sizes = [1, 8, 8], strides = [1, 1, 1]} : vector<1x8x32xbf16> to vector<1x8x8xbf16>
    "tpu.trace_start"() <{level = 10 : i32, message = "bnd,bmd->bnm"}> : () -> ()
    %cst_26 = arith.constant dense<0.000000e+00> : vector<1x8x8xf32>
    %82 = tpu.matmul %80, %81, %cst_26 {dimension_numbers = #tpu.dot_dimension_numbers<[2], [2], [1], [1], [0, 0, 0, 1, 1, 1], [0], [0]>} : vector<1x8x8xbf16>, vector<1x8x8xbf16>, vector<1x8x8xf32> -> vector<1x8x8xf32>
    "tpu.trace_stop"() : () -> ()
    %cst_27 = arith.constant dense<0xFF800000> : vector<1x8xf32>
    %83 = vector.multi_reduction <maximumf>, %82, %cst_27 [2] : vector<1x8x8xf32> to vector<1x8xf32>
    %84 = vector.shape_cast %83 : vector<1x8xf32> to vector<1x8x1xf32>
    %85 = vector.broadcast %84 : vector<1x8x1xf32> to vector<1x8x8xf32>
    %86 = arith.subf %82, %85 : vector<1x8x8xf32>
    %87 = math.exp %86 : vector<1x8x8xf32>
    %cst_28 = arith.constant dense<0.000000e+00> : vector<1x8xf32>
    %88 = vector.multi_reduction <add>, %87, %cst_28 [2] : vector<1x8x8xf32> to vector<1x8xf32>
    %89 = vector.shape_cast %88 : vector<1x8xf32> to vector<1x8x1xf32>
    %90 = tpu.reciprocal %89 {approx = true} : vector<1x8x1xf32> -> vector<1x8x1xf32>
    %91 = vector.broadcast %90 : vector<1x8x1xf32> to vector<1x8x8xf32>
    %92 = arith.mulf %87, %91 : vector<1x8x8xf32>
    %93 = arith.truncf %92 : vector<1x8x8xf32> to vector<1x8x8xbf16>
    %94 = vector.extract_strided_slice %45 {offsets = [0, 0, 16], sizes = [1, 8, 8], strides = [1, 1, 1]} : vector<1x8x32xbf16> to vector<1x8x8xbf16>
    "tpu.trace_start"() <{level = 10 : i32, message = "bnm,bmd->bnd"}> : () -> ()
    %cst_29 = arith.constant dense<0.000000e+00> : vector<1x8x8xf32>
    %95 = tpu.matmul %93, %94, %cst_29 {dimension_numbers = #tpu.dot_dimension_numbers<[2], [1], [1], [2], [0, 0, 0, 1, 1, 2], [0], [0]>} : vector<1x8x8xbf16>, vector<1x8x8xbf16>, vector<1x8x8xf32> -> vector<1x8x8xf32>
    "tpu.trace_stop"() : () -> ()
    %96 = arith.truncf %95 : vector<1x8x8xf32> to vector<1x8x8xbf16>
    %97 = vector.extract_strided_slice %39 {offsets = [0, 0, 24], sizes = [1, 8, 8], strides = [1, 1, 1]} : vector<1x8x32xbf16> to vector<1x8x8xbf16>
    %98 = vector.extract_strided_slice %42 {offsets = [0, 0, 24], sizes = [1, 8, 8], strides = [1, 1, 1]} : vector<1x8x32xbf16> to vector<1x8x8xbf16>
    "tpu.trace_start"() <{level = 10 : i32, message = "bnd,bmd->bnm"}> : () -> ()
    %cst_30 = arith.constant dense<0.000000e+00> : vector<1x8x8xf32>
    %99 = tpu.matmul %97, %98, %cst_30 {dimension_numbers = #tpu.dot_dimension_numbers<[2], [2], [1], [1], [0, 0, 0, 1, 1, 1], [0], [0]>} : vector<1x8x8xbf16>, vector<1x8x8xbf16>, vector<1x8x8xf32> -> vector<1x8x8xf32>
    "tpu.trace_stop"() : () -> ()
    %cst_31 = arith.constant dense<0xFF800000> : vector<1x8xf32>
    %100 = vector.multi_reduction <maximumf>, %99, %cst_31 [2] : vector<1x8x8xf32> to vector<1x8xf32>
    %101 = vector.shape_cast %100 : vector<1x8xf32> to vector<1x8x1xf32>
    %102 = vector.broadcast %101 : vector<1x8x1xf32> to vector<1x8x8xf32>
    %103 = arith.subf %99, %102 : vector<1x8x8xf32>
    %104 = math.exp %103 : vector<1x8x8xf32>
    %cst_32 = arith.constant dense<0.000000e+00> : vector<1x8xf32>
    %105 = vector.multi_reduction <add>, %104, %cst_32 [2] : vector<1x8x8xf32> to vector<1x8xf32>
    %106 = vector.shape_cast %105 : vector<1x8xf32> to vector<1x8x1xf32>
    %107 = tpu.reciprocal %106 {approx = true} : vector<1x8x1xf32> -> vector<1x8x1xf32>
    %108 = vector.broadcast %107 : vector<1x8x1xf32> to vector<1x8x8xf32>
    %109 = arith.mulf %104, %108 : vector<1x8x8xf32>
    %110 = arith.truncf %109 : vector<1x8x8xf32> to vector<1x8x8xbf16>
    %111 = vector.extract_strided_slice %45 {offsets = [0, 0, 24], sizes = [1, 8, 8], strides = [1, 1, 1]} : vector<1x8x32xbf16> to vector<1x8x8xbf16>
    "tpu.trace_start"() <{level = 10 : i32, message = "bnm,bmd->bnd"}> : () -> ()
    %cst_33 = arith.constant dense<0.000000e+00> : vector<1x8x8xf32>
    %112 = tpu.matmul %110, %111, %cst_33 {dimension_numbers = #tpu.dot_dimension_numbers<[2], [1], [1], [2], [0, 0, 0, 1, 1, 2], [0], [0]>} : vector<1x8x8xbf16>, vector<1x8x8xbf16>, vector<1x8x8xf32> -> vector<1x8x8xf32>
    "tpu.trace_stop"() : () -> ()
    %113 = arith.truncf %112 : vector<1x8x8xf32> to vector<1x8x8xbf16>
    %114 = tpu.concatenate %62, %79, %96, %113 in 2 : vector<1x8x8xbf16>, vector<1x8x8xbf16>, vector<1x8x8xbf16>, vector<1x8x8xbf16> -> vector<1x8x32xbf16>
    %115 = vector.shape_cast %114 : vector<1x8x32xbf16> to vector<8x32xbf16>
    %c0_34 = arith.constant 0 : index
    %c0_35 = arith.constant 0 : index
    %c0_36 = arith.constant 0 : index
    %116 = vector.load %arg6[%c0_34, %c0_35, %c0_36] : memref<1x32x32xbf16, #tpu.memory_space<vmem>>, vector<1x32x32xbf16>
    %117 = vector.shape_cast %116 : vector<1x32x32xbf16> to vector<32x32xbf16>
    %cst_37 = arith.constant dense<0.000000e+00> : vector<8x32xf32>
    %118 = tpu.matmul %115, %117, %cst_37 {dimension_numbers = #tpu.dot_dimension_numbers<[1], [0], [0], [1], [0, 0, 1, 1], [], []>} : vector<8x32xbf16>, vector<32x32xbf16>, vector<8x32xf32> -> vector<8x32xf32>
    %c0_38 = arith.constant 0 : index
    %c0_39 = arith.constant 0 : index
    %c0_40 = arith.constant 0 : index
    %119 = vector.load %arg7[%c0_38, %c0_39, %c0_40] : memref<1x1x32xf32, #tpu.memory_space<vmem>>, vector<1x1x32xf32>
    %120 = vector.shape_cast %119 : vector<1x1x32xf32> to vector<1x32xf32>
    %121 = vector.broadcast %120 : vector<1x32xf32> to vector<8x32xf32>
    %122 = arith.addf %118, %121 : vector<8x32xf32>
    %123 = vector.shape_cast %122 : vector<8x32xf32> to vector<1x8x32xf32>
    %124 = arith.addf %3, %123 : vector<1x8x32xf32>
    %c0_41 = arith.constant 0 : index
    %c0_42 = arith.constant 0 : index
    %c0_43 = arith.constant 0 : index
    %125 = vector.load %arg8[%c0_41, %c0_42, %c0_43] : memref<1x1x32xf32, #tpu.memory_space<vmem>>, vector<1x1x32xf32>
    %126 = vector.shape_cast %125 : vector<1x1x32xf32> to vector<1x32xf32>
    %c0_44 = arith.constant 0 : index
    %c0_45 = arith.constant 0 : index
    %c0_46 = arith.constant 0 : index
    %127 = vector.load %arg9[%c0_44, %c0_45, %c0_46] : memref<1x1x32xf32, #tpu.memory_space<vmem>>, vector<1x1x32xf32>
    %128 = vector.shape_cast %127 : vector<1x1x32xf32> to vector<1x32xf32>
    %cst_47 = arith.constant dense<0.000000e+00> : vector<1x8xf32>
    %129 = vector.multi_reduction <add>, %124, %cst_47 [2] : vector<1x8x32xf32> to vector<1x8xf32>
    %130 = vector.shape_cast %129 : vector<1x8xf32> to vector<1x8x1xf32>
    %cst_48 = arith.constant 3.200000e+01 : f32
    %131 = vector.broadcast %cst_48 : f32 to vector<1x8x1xf32>
    %132 = arith.divf %130, %131 : vector<1x8x1xf32>
    %133 = vector.broadcast %132 : vector<1x8x1xf32> to vector<1x8x32xf32>
    %134 = arith.subf %124, %133 : vector<1x8x32xf32>
    %135 = arith.mulf %134, %134 : vector<1x8x32xf32>
    %cst_49 = arith.constant dense<0.000000e+00> : vector<1x8xf32>
    %136 = vector.multi_reduction <add>, %135, %cst_49 [2] : vector<1x8x32xf32> to vector<1x8xf32>
    %137 = vector.shape_cast %136 : vector<1x8xf32> to vector<1x8x1xf32>
    %cst_50 = arith.constant 3.200000e+01 : f32
    %138 = vector.broadcast %cst_50 : f32 to vector<1x8x1xf32>
    %139 = arith.divf %137, %138 : vector<1x8x1xf32>
    %cst_51 = arith.constant 9.99999974E-6 : f32
    %140 = vector.broadcast %cst_51 : f32 to vector<1x8x1xf32>
    %141 = arith.addf %139, %140 : vector<1x8x1xf32>
    %142 = math.rsqrt %141 : vector<1x8x1xf32>
    %143 = vector.broadcast %142 : vector<1x8x1xf32> to vector<1x8x32xf32>
    %144 = arith.mulf %134, %143 : vector<1x8x32xf32>
    %145 = vector.shape_cast %126 : vector<1x32xf32> to vector<1x1x32xf32>
    %146 = vector.broadcast %145 : vector<1x1x32xf32> to vector<1x8x32xf32>
    %147 = arith.mulf %144, %146 : vector<1x8x32xf32>
    %148 = vector.shape_cast %128 : vector<1x32xf32> to vector<1x1x32xf32>
    %149 = vector.broadcast %148 : vector<1x1x32xf32> to vector<1x8x32xf32>
    %150 = arith.addf %147, %149 : vector<1x8x32xf32>
    %151 = vector.shape_cast %150 : vector<1x8x32xf32> to vector<8x32xf32>
    %152 = arith.truncf %151 : vector<8x32xf32> to vector<8x32xbf16>
    %c0_52 = arith.constant 0 : index
    %c0_53 = arith.constant 0 : index
    %c0_54 = arith.constant 0 : index
    %153 = vector.load %arg10[%c0_52, %c0_53, %c0_54] : memref<1x32x128xbf16, #tpu.memory_space<vmem>>, vector<1x32x128xbf16>
    %154 = vector.shape_cast %153 : vector<1x32x128xbf16> to vector<32x128xbf16>
    %cst_55 = arith.constant dense<0.000000e+00> : vector<8x128xf32>
    %155 = tpu.matmul %152, %154, %cst_55 {dimension_numbers = #tpu.dot_dimension_numbers<[1], [0], [0], [1], [0, 0, 1, 1], [], []>} : vector<8x32xbf16>, vector<32x128xbf16>, vector<8x128xf32> -> vector<8x128xf32>
    %c0_56 = arith.constant 0 : index
    %c0_57 = arith.constant 0 : index
    %c0_58 = arith.constant 0 : index
    %156 = vector.load %arg11[%c0_56, %c0_57, %c0_58] : memref<1x1x128xf32, #tpu.memory_space<vmem>>, vector<1x1x128xf32>
    %157 = vector.shape_cast %156 : vector<1x1x128xf32> to vector<1x128xf32>
    %158 = vector.broadcast %157 : vector<1x128xf32> to vector<8x128xf32>
    %159 = arith.addf %155, %158 : vector<8x128xf32>
    %cst_59 = arith.constant 5.000000e-01 : f32
    %160 = vector.broadcast %cst_59 : f32 to vector<8x128xf32>
    %161 = arith.mulf %160, %159 : vector<8x128xf32>
    %cst_60 = arith.constant 0.707106769 : f32
    %162 = vector.broadcast %cst_60 : f32 to vector<8x128xf32>
    %163 = arith.mulf %159, %162 : vector<8x128xf32>
    %164 = math.erf %163 : vector<8x128xf32>
    %cst_61 = arith.constant 1.000000e+00 : f32
    %165 = vector.broadcast %cst_61 : f32 to vector<8x128xf32>
    %166 = arith.addf %165, %164 : vector<8x128xf32>
    %167 = arith.mulf %161, %166 : vector<8x128xf32>
    %168 = arith.truncf %167 : vector<8x128xf32> to vector<8x128xbf16>
    %c0_62 = arith.constant 0 : index
    %c0_63 = arith.constant 0 : index
    %c0_64 = arith.constant 0 : index
    %169 = vector.load %arg12[%c0_62, %c0_63, %c0_64] : memref<1x128x32xbf16, #tpu.memory_space<vmem>>, vector<1x128x32xbf16>
    %170 = vector.shape_cast %169 : vector<1x128x32xbf16> to vector<128x32xbf16>
    %cst_65 = arith.constant dense<0.000000e+00> : vector<8x32xf32>
    %171 = tpu.matmul %168, %170, %cst_65 {dimension_numbers = #tpu.dot_dimension_numbers<[1], [0], [0], [1], [0, 0, 1, 1], [], []>} : vector<8x128xbf16>, vector<128x32xbf16>, vector<8x32xf32> -> vector<8x32xf32>
    %c0_66 = arith.constant 0 : index
    %c0_67 = arith.constant 0 : index
    %c0_68 = arith.constant 0 : index
    %172 = vector.load %arg13[%c0_66, %c0_67, %c0_68] : memref<1x1x32xf32, #tpu.memory_space<vmem>>, vector<1x1x32xf32>
    %173 = vector.shape_cast %172 : vector<1x1x32xf32> to vector<1x32xf32>
    %174 = vector.broadcast %173 : vector<1x32xf32> to vector<8x32xf32>
    %175 = arith.addf %171, %174 : vector<8x32xf32>
    %176 = vector.shape_cast %175 : vector<8x32xf32> to vector<1x8x32xf32>
    %177 = arith.addf %124, %176 : vector<1x8x32xf32>
    %c0_69 = arith.constant 0 : index
    %c0_70 = arith.constant 0 : index
    %c0_71 = arith.constant 0 : index
    %178 = vector.load %arg17[%c0_69, %c0_70, %c0_71] : memref<1x8x32xf32, #tpu.memory_space<vmem>>, vector<1x8x32xf32>
    tpu.vector_store %arg17[%c0_69, %c0_70, %c0_71], %177 {strides = array<i32>} : memref<1x8x32xf32, #tpu.memory_space<vmem>>, vector<1x8x32xf32>,
    %c1_i32 = arith.constant 1 : i32
    %179 = arith.cmpi eq, %arg1, %c1_i32 : i32
    %180 = arith.extui %179 : i1 to i32
    %c0_i32_72 = arith.constant 0 : i32
    %181 = arith.cmpi ne, %180, %c0_i32_72 : i32
    scf.if %181 {
      %c0_73 = arith.constant 0 : index
      %c0_74 = arith.constant 0 : index
      %182 = vector.load %arg14[%c0_73, %c0_74] : memref<1x32xf32, #tpu.memory_space<vmem>>, vector<1x32xf32>
      %c0_75 = arith.constant 0 : index
      %c0_76 = arith.constant 0 : index
      %183 = vector.load %arg15[%c0_75, %c0_76] : memref<1x32xf32, #tpu.memory_space<vmem>>, vector<1x32xf32>
      %cst_77 = arith.constant dense<0.000000e+00> : vector<1x8xf32>
      %184 = vector.multi_reduction <add>, %177, %cst_77 [2] : vector<1x8x32xf32> to vector<1x8xf32>
      %185 = vector.shape_cast %184 : vector<1x8xf32> to vector<1x8x1xf32>
      %cst_78 = arith.constant 3.200000e+01 : f32
      %186 = vector.broadcast %cst_78 : f32 to vector<1x8x1xf32>
      %187 = arith.divf %185, %186 : vector<1x8x1xf32>
      %188 = vector.broadcast %187 : vector<1x8x1xf32> to vector<1x8x32xf32>
      %189 = arith.subf %177, %188 : vector<1x8x32xf32>
      %190 = arith.mulf %189, %189 : vector<1x8x32xf32>
      %cst_79 = arith.constant dense<0.000000e+00> : vector<1x8xf32>
      %191 = vector.multi_reduction <add>, %190, %cst_79 [2] : vector<1x8x32xf32> to vector<1x8xf32>
      %192 = vector.shape_cast %191 : vector<1x8xf32> to vector<1x8x1xf32>
      %cst_80 = arith.constant 3.200000e+01 : f32
      %193 = vector.broadcast %cst_80 : f32 to vector<1x8x1xf32>
      %194 = arith.divf %192, %193 : vector<1x8x1xf32>
      %cst_81 = arith.constant 9.99999974E-6 : f32
      %195 = vector.broadcast %cst_81 : f32 to vector<1x8x1xf32>
      %196 = arith.addf %194, %195 : vector<1x8x1xf32>
      %197 = math.rsqrt %196 : vector<1x8x1xf32>
      %198 = vector.broadcast %197 : vector<1x8x1xf32> to vector<1x8x32xf32>
      %199 = arith.mulf %189, %198 : vector<1x8x32xf32>
      %200 = vector.shape_cast %182 : vector<1x32xf32> to vector<1x1x32xf32>
      %201 = vector.broadcast %200 : vector<1x1x32xf32> to vector<1x8x32xf32>
      %202 = arith.mulf %199, %201 : vector<1x8x32xf32>
      %203 = vector.shape_cast %183 : vector<1x32xf32> to vector<1x1x32xf32>
      %204 = vector.broadcast %203 : vector<1x1x32xf32> to vector<1x8x32xf32>
      %205 = arith.addf %202, %204 : vector<1x8x32xf32>
      %c0_82 = arith.constant 0 : index
      %c0_83 = arith.constant 0 : index
      %c0_84 = arith.constant 0 : index
      %206 = vector.load %arg16[%c0_82, %c0_83, %c0_84] : memref<1x8x32xf32, #tpu.memory_space<vmem>>, vector<1x8x32xf32>
      tpu.vector_store %arg16[%c0_82, %c0_83, %c0_84], %205 {strides = array<i32>} : memref<1x8x32xf32, #tpu.memory_space<vmem>>, vector<1x8x32xf32>,
    } else {
    }
    return
  }
  func.func @transform_0(%arg0: i32, %arg1: i32) -> (i32, i32, i32) {
    %c0_i32 = arith.constant 0 : i32
    %c0_i32_0 = arith.constant 0 : i32
    %c0_i32_1 = arith.constant 0 : i32
    return %arg0, %c0_i32, %c0_i32_0 : i32, i32, i32
  }
  func.func @transform_1(%arg0: i32, %arg1: i32) -> (i32, i32, i32) {
    %c0_i32 = arith.constant 0 : i32
    %c0_i32_0 = arith.constant 0 : i32
    %c0_i32_1 = arith.constant 0 : i32
    return %arg1, %c0_i32, %c0_i32_0 : i32, i32, i32
  }
  func.func @transform_2(%arg0: i32, %arg1: i32) -> (i32, i32, i32) {
    %c0_i32 = arith.constant 0 : i32
    %c0_i32_0 = arith.constant 0 : i32
    %c0_i32_1 = arith.constant 0 : i32
    return %arg1, %c0_i32, %c0_i32_0 : i32, i32, i32
  }
  func.func @transform_3(%arg0: i32, %arg1: i32) -> (i32, i32, i32) {
    %c0_i32 = arith.constant 0 : i32
    %c0_i32_0 = arith.constant 0 : i32
    %c0_i32_1 = arith.constant 0 : i32
    return %arg1, %c0_i32, %c0_i32_0 : i32, i32, i32
  }
  func.func @transform_4(%arg0: i32, %arg1: i32) -> (i32, i32, i32) {
    %c0_i32 = arith.constant 0 : i32
    %c0_i32_0 = arith.constant 0 : i32
    %c0_i32_1 = arith.constant 0 : i32
    return %arg1, %c0_i32, %c0_i32_0 : i32, i32, i32
  }
  func.func @transform_5(%arg0: i32, %arg1: i32) -> (i32, i32, i32) {
    %c0_i32 = arith.constant 0 : i32
    %c0_i32_0 = arith.constant 0 : i32
    %c0_i32_1 = arith.constant 0 : i32
    return %arg1, %c0_i32, %c0_i32_0 : i32, i32, i32
  }
  func.func @transform_6(%arg0: i32, %arg1: i32) -> (i32, i32, i32) {
    %c0_i32 = arith.constant 0 : i32
    %c0_i32_0 = arith.constant 0 : i32
    %c0_i32_1 = arith.constant 0 : i32
    return %arg1, %c0_i32, %c0_i32_0 : i32, i32, i32
  }
  func.func @transform_7(%arg0: i32, %arg1: i32) -> (i32, i32, i32) {
    %c0_i32 = arith.constant 0 : i32
    %c0_i32_0 = arith.constant 0 : i32
    %c0_i32_1 = arith.constant 0 : i32
    return %arg1, %c0_i32, %c0_i32_0 : i32, i32, i32
  }
  func.func @transform_8(%arg0: i32, %arg1: i32) -> (i32, i32, i32) {
    %c0_i32 = arith.constant 0 : i32
    %c0_i32_0 = arith.constant 0 : i32
    %c0_i32_1 = arith.constant 0 : i32
    return %arg1, %c0_i32, %c0_i32_0 : i32, i32, i32
  }
  func.func @transform_9(%arg0: i32, %arg1: i32) -> (i32, i32, i32) {
    %c0_i32 = arith.constant 0 : i32
    %c0_i32_0 = arith.constant 0 : i32
    %c0_i32_1 = arith.constant 0 : i32
    return %arg1, %c0_i32, %c0_i32_0 : i32, i32, i32
  }
  func.func @transform_10(%arg0: i32, %arg1: i32) -> (i32, i32, i32) {
    %c0_i32 = arith.constant 0 : i32
    %c0_i32_0 = arith.constant 0 : i32
    %c0_i32_1 = arith.constant 0 : i32
    return %arg1, %c0_i32, %c0_i32_0 : i32, i32, i32
  }
  func.func @transform_11(%arg0: i32, %arg1: i32) -> (i32, i32, i32) {
    %c0_i32 = arith.constant 0 : i32
    %c0_i32_0 = arith.constant 0 : i32
    %c0_i32_1 = arith.constant 0 : i32
    return %arg1, %c0_i32, %c0_i32_0 : i32, i32, i32
  }
  func.func @transform_12(%arg0: i32, %arg1: i32) -> (i32, i32) {
    %c0_i32 = arith.constant 0 : i32
    %c0_i32_0 = arith.constant 0 : i32
    %c0_i32_1 = arith.constant 0 : i32
    return %c0_i32, %c0_i32_0 : i32, i32
  }
  func.func @transform_13(%arg0: i32, %arg1: i32) -> (i32, i32) {
    %c0_i32 = arith.constant 0 : i32
    %c0_i32_0 = arith.constant 0 : i32
    %c0_i32_1 = arith.constant 0 : i32
    return %c0_i32, %c0_i32_0 : i32, i32
  }
  func.func @transform_14(%arg0: i32, %arg1: i32) -> (i32, i32, i32) {
    %c0_i32 = arith.constant 0 : i32
    %c0_i32_0 = arith.constant 0 : i32
    %c0_i32_1 = arith.constant 0 : i32
    return %arg0, %c0_i32, %c0_i32_0 : i32, i32, i32
  }
}

</mosaic_0001>

<bundles_post_ra>
// kernel: tpu_custom_call.1
= control target key start
LH: loop header
LB: loop body
LE: loop exit
PB: predicated region body
PF: predicated region fallthrough
CT: control target
= control target key end

     0   :  { %s2569_s0 = inlined_call_operand.vmem [shape: f32[2,8,32], index: 0, kind: input, shape index: {}]   ;;  %s2570_s1 = inlined_call_operand.vmem [shape: f32[2,1,32], index: 1, kind: input, shape index: {}]   ;;  %s2571_s2 = inlined_call_operand.vmem [shape: f32[2,1,32], index: 2, kind: input, shape index: {}]   ;;  %s2572_s3 = inlined_call_operand.vmem [shape: bf16[2,32,96], index: 3, kind: input, shape index: {}]   ;;  %s2573_s4 = inlined_call_operand.vmem [shape: bf16[2,32,32], index: 4, kind: input, shape index: {}]   ;;  %s2574_s5 = inlined_call_operand.vmem [shape: f32[2,1,32], index: 5, kind: input, shape index: {}]   ;;  %s2575_s6 = inlined_call_operand.vmem [shape: f32[2,1,32], index: 6, kind: input, shape index: {}]   ;;  %s2576_s7 = inlined_call_operand.vmem [shape: f32[2,1,32], index: 7, kind: input, shape index: {}]   ;;  %s2577_s8 = inlined_call_operand.vmem [shape: bf16[2,32,128], index: 8, kind: input, shape index: {}]   ;;  %s2578_s9 = inlined_call_operand.vmem [shape: f32[2,1,128], index: 9, kind: input, shape index: {}]   ;;  %s2579_s10 = inlined_call_operand.vmem [shape: bf16[2,128,32], index: 10, kind: input, shape index: {}]   ;;  %s2580_s11 = inlined_call_operand.vmem [shape: f32[2,1,32], index: 11, kind: input, shape index: {}]   ;;  %s2581_s12 = inlined_call_operand.vmem [shape: f32[1,32], index: 12, kind: input, shape index: {}]   ;;  %s2582_s13 = inlined_call_operand.vmem [shape: f32[1,32], index: 13, kind: input, shape index: {}]   ;;  %s2583_s14 = inlined_call_operand.hbm [shape: f32[2,8,32], index: 14, kind: output, shape index: {}]  }
   0x1   :  { %2599 = sst [smem:[#allocation19_spill]] %s2569_s0 }
   0x2   :  { %2600 = sst [smem:[#allocation20_spill]] %s2572_s3 }
   0x3   :  { %2601 = sst [smem:[#allocation21_spill]] %s2573_s4 }
   0x4   :  { %2602 = sst [smem:[#allocation22_spill]] %s2581_s12 }
   0x5   :  { %2603 = sst [smem:[#allocation23_spill]] %s2582_s13 }
   0x6   :  { %2604 = sst [smem:[#allocation24_spill]] %s2583_s14 }
   0x7   :  { %19 = vsyncpa [#allocation4], 0 }
   0x8   :  { %21 = vsyncpa [#allocation4 + $0x1], 0  ;;  %s2226_s29 = smov 0   ;;  %s2228_s30 = smov 0  }
   0x9   :  { %s2230_s15 = smov 0   ;;  %s2232_s16 = smov 0  }
   0xa   :  { %s2234_s17 = smov 0   ;;  %s2236_s18 = smov 0  }
   0xb   :  { %s2238_s19 = smov 0   ;;  %s2240_s20 = smov 0  }
   0xc LB: > { %2605 = sst [smem:[#allocation6_spill]] %s2104_s29  ;;  %s1730_s21 = sadd.s32 4294967295, %s2132_s20   ;;  %s2132_s20 = sphi %s2240_s20, %s27_s20   ;;  %s2128_s19 = sphi %s2238_s19, %s2645_s19   ;;  %s2124_s18 = sphi %s2236_s18, %s2644_s18   ;;  %s2120_s17 = sphi %s2234_s17, %s2643_s17   ;;  %s2116_s16 = sphi %s2232_s16, %s2642_s16   ;;  %s2112_s15 = sphi %s2230_s15, %s2641_s15   ;;  %s2108_s30 = sphi %s2228_s30, %s2640_s30   ;;  %s2104_s29 = sphi %s2226_s29, %s2639_s29  }
   0xd   : > { %2606 = sst [smem:[#allocation7_spill]] %s2108_s30  ;;  %s1731_s22 = sadd.s32 4294967294, %s2132_s20  }
   0xe   : > { %2607 = sst [smem:[#allocation8_spill]] %s2112_s15  ;;  %s36_s23 = sadd.s32 1, %s2124_s18 }
   0xf   : > { %2608 = sst [smem:[#allocation9_spill]] %s2116_s16  ;;  %p37_p0 = scmp.ge.s32.totalorder %s36_s23, 2 }
  0x10   : > { %2609 = sst [smem:[#allocation10_spill]] %s2120_s17  ;;  %s39_s24 = sadd.s32 1, %s2128_s19 }
  0x11   : > { %2610 = sst [smem:[#allocation11_spill]] %s2124_s18  ;;  %p410_p1 = scmp.ne.s32.totalorder %s2112_s15, %s2108_s30 }
  0x12   : > { %2611 = sst [smem:[#allocation12_spill]] %s2128_s19  ;;  %p411_p2 = scmp.eq.s32.totalorder %s1730_s21, 3 }
  0x13   : > { %2612 = sst [smem:[#allocation13_spill]] %s2132_s20  ;;  %s2647_s23 = smov (%p37_p0, %s36_s23), 0 }
  0x14   : > { %2613 = sst [smem:[#allocation14_spill]] %s2647_s23  ;;  %s2649_s24 = smov (!%p37_p0, %s39_s24), %s2128_s19 }
  0x15   : > { %p2275_p3 = por %p411_p2, %p410_p1  ;;  %p416_p4 = scmp.ne.s32.totalorder %s2108_s30, %s2104_s29 }
  0x16   : > { %p41_p5 = scmp.ge.s32.totalorder %s2649_s24, 2  ;;  %p417_p6 = scmp.eq.s32.totalorder %s1731_s22, 3 }
  0x17   : > { %s2614_s25 = scalar_select %p2275_p3, 1, 0 }
  0x18   : > { %p1734_p7 = scmp.ge.s32.totalorder %s2132_s20, 1  ;;  %p522_p8 = scmp.lt.s32.totalorder %s2132_s20, 5 }
  0x19   : > { %2615 = sst [smem:[#allocation15_spill]] %s2614_s25  ;;  %s2651_s24 = smov (%p41_p5, %s2649_s24), 0 }
  0x1a   : > { %2616 = sst [smem:[#allocation16_spill]] %s2651_s24  ;;  %p2285_p9 = por %p417_p6, %p416_p4 }
  0x1b   : > { %p523_p10 = pnand %p1734_p7, %p522_p8  ;;  %s397_s27 = ssub.s32 %s2128_s19, %s2651_s24 }
  0x1c   : > { %s2617_s26 = scalar_select %p2285_p9, 1, 0 }
  0x1d   : > { %s400_s28 = sadd.s32 1, %s2112_s15  ;;  %p398_p11 = scmp.eq.s32.totalorder %s397_s27, 0 }
  0x1e   : > { %2618 = sst [smem:[#allocation17_spill]] %s2617_s26  ;;  %526 = sbr.rel (%p523_p10) target bundleno = 2827 (0xb0b), region = 76 }
  0x1f   : > { %s2293_s21 = scalar_select %p398_p11, %s2112_s15, %s400_s28  }
  0x20   : > { %s2587_s22 = sand.u32 (!%p523_p10), 1, %s2108_s30   ;;  %p608_p12 = scmp.lt.s32.totalorder (!%p523_p10), %s2120_s17, 1 }
  0x21   : > { %2619 = sst [smem:[#allocation18_spill]] %s2293_s21  ;;  %s2299_s23 = sshll.u32 (!%p523_p10), %s2587_s22, 3 }
  0x22   : > { %p612_p13 = scmp.lt.s32.totalorder (!%p523_p10), %s2116_s16, 1  ;;  %s2620_s0 = sld [smem:[#allocation19_spill]] (!%p523_p10) }
  0x23   : > { %s609_s18 = scalar_select %p608_p12, %s2120_s17, 1 }
  0x24   : > { %s2304_s26 = scalar_select %p612_p13, %s2116_s16, 1 }
  0x25   : > { %s1736_s27 = sshll.u32 %s609_s18, 3  ;;  %s2621_s3 = sld [smem:[#allocation20_spill]] }
  0x26   : > { %s1785_s25 = sshll.u32 %s2304_s26, 4  ;;  %s2622_s4 = sld [smem:[#allocation21_spill]] }
  0x27   : > { %s633_s29 = scalar_lea.vmem %s2575_s6, %s2304_s26  ;;  %s652_s14 = scalar_lea.vmem %s2580_s11, %s2304_s26 }
  0x28   : > { %s611_s22 = scalar_lea.vmem %s2620_s0, %s1736_s27  ;;  %s2343_s0 = scalar_lea.vmem %s2577_s8, %s1785_s25 }
  0x29   : > { %s607_s20 = scalar_lea.vmem [#allocation3], %s2299_s23  ;;  %s2623_s15 = sld [smem:[#allocation9_spill]] }
  0x2b   : > { %s2321_s13 = scalar_lea.vmem %s2621_s3, %s1785_s25  ;;  %s644_s3 = scalar_lea.vmem %s2578_s9, %s2304_s26 }
  0x2c   : > { %s2326_s16 = scalar_lea.vmem %s2622_s4, %s1785_s25  ;;  %s1788_s4 = sshll.u32 %s2304_s26, 6 }
  0x2d   : > { %s2353_s19 = scalar_lea.vmem %s2579_s10, %s1788_s4 }
  0x2f   : > { %p1745_p0 = scmp.ne.s32.totalorder %s2623_s15, 0 }
  0x31   : > { %657 = sbr.rel (%p1745_p0) target bundleno = 56 (0x38), region = 80 }
  0x36   : > { %v658_v0 = vld [vmem:[%s611_s22] sm:$0xff]  ;;  %vm659_vm0 = vcmask 261120  }
  0x37   : > { %660 = vst.msk [vmem:[#allocation2] sm:$0xff] %vm659_vm0, %v658_v0 }
  0x38 PF: > { %vm664_vm1 = vcmask 261120   ;;  %v2002_v8 = vld [vmem:[%s2321_s13 + $0x8] sm:$0xff]   ;;  %v2134_v9 = vmov 0.0   ;;  %vm2135_vm2 = vmmov 0   ;;  %v2003_v10 = vld [vmem:[%s2321_s13] sm:$0xff]   ;;  %s2624_s25 = scalar_lea.vmem %s2570_s1, %s2304_s26  ;;  %s2625_s30 = scalar_lea.vmem %s2571_s2, %s2304_s26  ;;  %vm759_vm3 = vcmask 64512  }
  0x39   : > { %1823 = vmatprep.subr.bf16.mxu0 %v2134_v9  ;;  %1827 = vmatprep.mubr.msk.bf16.mxu0 %vm2135_vm2, %v2134_v9  ;;  %v1746_v15 = vld [vmem:[%s2624_s25] ss:$0 sm:$0xff]  ;;  %s2136_s17 = smov 96   ;;  %s2137_s12 = smov 120   ;;  %vm823_vm4 = vcmask 1043456   ;;  %vm1214_vm5 = vcmask 130048  }
  0x3a   : > { %1824 = vmatpush3.bf16.msra.mxu0 %v2002_v8  ;;  %1843 = vmatprep.subr.bf16.mxu1 %v2134_v9  ;;  %v1747_v17 = vld [vmem:[%s2625_s30] ss:$0 sm:$0xff]  ;;  %s2138_s18 = smov 88   ;;  %s2139_s24 = smov 80   ;;  %vm1217_vm6 = vcmask 195584  }
  0x3b   : > { %1825 = vmatprep.subr.bf16.mxu0 %v2134_v9  ;;  %1845 = vmatprep.mubr.msk.bf16.mxu1 %vm2135_vm2, %v2134_v9  ;;  %s2140_s27 = smov 112   ;;  %s2141_s21 = smov 72  }
  0x3c   : > { %s2142_s28 = smov 104   ;;  %s2143_s4 = smov 64  }
  0x3d   : > { %s2144_s15 = smov 56   ;;  %s2145_s25 = smov 48  }
  0x3e   : > { %v2361_v1 = vld [vmem:[#allocation2] sm:$0xff]  ;;  %1826 = vmatpush3.bf16.msra.mxu0 %v2003_v10  ;;  %s2146_s13 = smov 40   ;;  %s2147_s22 = smov 8  }
  0x3f   : > { %v665_v2 = vsel %vm664_vm1, %v2361_v1, 0.0  ;;  %1831 = vmatprep.subr.bf16.mxu0 %v2134_v9  ;;  %s2148_s30 = smov 16  }
  0x40   : > { %666 = vadd.xlane.f32.xlu0 %v665_v2 }
  0xc9   : > { %v667_v3 = vpop.xlane.xlu0 %666 }
  0xca   : > { %v669_v4 = vmul.f32 0.03125, %v667_v3 }
  0xcc   : > { %v670_v5 = vsub.f32 %v2361_v1, %v669_v4 }
  0xce   : > { %v671_v6 = vmul.f32 %v670_v5, %v670_v5 }
  0xd0   : > { %v672_v7 = vsel %vm664_vm1, %v671_v6, 0.0 }
  0xd1   : > { %673 = vadd.xlane.f32.xlu0 %v672_v7 }
 0x15a   : > { %v674_v11 = vpop.xlane.xlu0 %673 }
 0x15b   : > { %v675_v12 = vmul.f32 0.03125, %v674_v11 }
 0x15d   : > { %v676_v13 = vadd.f32 1e-05, %v675_v12 }
 0x15f   : > { %2016 = vrsqrt.f32 %v676_v13 }
 0x16c   : > { %v2017_v14 = vpop.eup %2016 }
 0x16d   : > { %v678_v16 = vmul.f32 %v2017_v14, %v670_v5 }
 0x16f   : > { %v685_v18 = vmul.f32 %v1746_v15, %v678_v16 }
 0x171   : > { %v692_v19 = vadd.f32 %v1747_v17, %v685_v18 }
 0x173   : > { %v693_v20 = vpack.c.bf16 %v692_v19, %v692_v19 }
 0x175   : > { %1828 = vmatmul.mubr.msk.bf16.vlgmr.msra.gmra.mxu0 %vm664_vm1, %v693_v20 }
 0x176   : > { %1833 = vmatprep.mubr.msk.bf16.mxu0 %vm2135_vm2, %v2134_v9 }
 0x235   : > { %v747_v21 = vpop.f32.mrf.mxu0 }
 0x236   : > { %v753_v22 = vmul.f32 0.35355338, %v747_v21  ;;  %v2390_v23 = vpack.c.bf16 %v747_v21, %v747_v21 }
 0x237   : > { %v1829_v24 = vpop.f32.mrf.mxu0 }
 0x238   : > { %v754_v25 = vpack.c.bf16 %v753_v22, %v753_v22  ;;  %757 = vrot.lane.b32.xlu1 %v2390_v23, %s2136_s17  ;;  %s2149_s17 = smov 24  }
 0x239   : > { %v750_v26 = vpop.f32.mrf.mxu0 }
 0x23a   : > { %869 = vrot.lane.b32.xlu0 %v754_v25, %s2137_s12 }
 0x23b   : > { %v1830_v27 = vpop.f32.mrf.mxu0 }
 0x23c   : > { %871 = vrot.lane.b32.xlu1 %v2390_v23, %s2138_s18  ;;  %s2626_s18 = scalar_lea.vmem %s2574_s5, %s2304_s26 }
 0x240   : > { %982 = vrot.lane.b32.xlu1 %v2390_v23, %s2139_s24 }
 0x244   : > { %980 = vrot.lane.b32.xlu1 %v754_v25, %s2140_s27 }
 0x248   : > { %1093 = vrot.lane.b32.xlu1 %v2390_v23, %s2141_s21 }
 0x24c   : > { %1091 = vrot.lane.b32.xlu1 %v754_v25, %s2142_s28  ;;  %s2627_s28 = scalar_lea.vmem %s2576_s7, %s2304_s26 }
 0x2aa   : > { %v758_v28 = vpop.permute.xlu1 %757 }
 0x2ab   : > { %v764_v29 = vsel %vm759_vm3, %v758_v28, 0 }
 0x2ac   : > { %1832 = vmatpush3.bf16.xpose.msra.mxu0 %v764_v29  ;;  %v870_v33 = vpop.permute.xlu0 %869 }
 0x2ad   : > { %1837 = vmatprep.subr.bf16.mxu0 %v2134_v9 }
 0x2ae   : > { %v872_v30 = vpop.permute.xlu1 %871 }
 0x2af   : > { %v877_v31 = vsel %vm759_vm3, %v872_v30, 0 }
 0x2b0   : > { %1844 = vmatpush3.bf16.xpose.msra.mxu1 %v877_v31 }
 0x2b1   : > { %1855 = vmatprep.subr.bf16.mxu1 %v2134_v9 }
 0x2b2   : > { %v983_v32 = vpop.permute.xlu1 %982 }
 0x2b3   : > { %1834 = vmatmul.mubr.msk.bf16.vlgmr.msra.gmra.mxu0 %vm759_vm3, %v754_v25  ;;  %v988_v35 = vsel %vm759_vm3, %v983_v32, 0 }
 0x2b4   : > { %1839 = vmatprep.mubr.msk.bf16.mxu0 %vm2135_vm2, %v2134_v9 }
 0x2b6   : > { %v981_v34 = vpop.permute.xlu1 %980 }
 0x2b7   : > { %1846 = vmatmul.mubr.msk.bf16.vlgmr.msra.gmra.mxu1 %vm759_vm3, %v870_v33 }
 0x2b8   : > { %1856 = vmatpush3.bf16.xpose.msra.mxu1 %v988_v35  ;;  %1857 = vmatprep.mubr.msk.bf16.mxu1 %vm2135_vm2, %v2134_v9 }
 0x2b9   : > { %1867 = vmatprep.subr.bf16.mxu1 %v2134_v9 }
 0x2ba   : > { %v1094_v36 = vpop.permute.xlu1 %1093 }
 0x2bb   : > { %v1099_v37 = vsel %vm759_vm3, %v1094_v36, 0 }
 0x2be   : > { %v1092_v38 = vpop.permute.xlu1 %1091 }
 0x2bf   : > { %1858 = vmatmul.mubr.msk.bf16.vlgmr.msra.gmra.mxu1 %vm759_vm3, %v981_v34 }
 0x2c0   : > { %1868 = vmatpush3.bf16.xpose.msra.mxu1 %v1099_v37  ;;  %1869 = vmatprep.mubr.msk.bf16.mxu1 %vm2135_vm2, %v2134_v9 }
 0x2c1   : > { %1879 = vmatprep.subr.bf16.mxu1 %v2134_v9 }
 0x2c7   : > { %1870 = vmatmul.mubr.msk.bf16.vlgmr.msra.gmra.mxu1 %vm759_vm3, %v1092_v38 }
 0x2c8   : > { %1883 = vmatprep.mubr.msk.bf16.mxu1 %vm2135_vm2, %v2134_v9 }
 0x373   : > { %v800_v39 = vpop.f32.mrf.mxu0 }
 0x374   : > { %v806_v40 = vsel %vm759_vm3, %v800_v39, -inf }
 0x375   : > { %807 = vmax.xlane.f32.xlu1 %v806_v40  ;;  %v1835_v41 = vpop.f32.mrf.mxu0 }
 0x377   : > { %v803_v42 = vpop.f32.mrf.mxu0  ;;  %v913_v43 = vpop.f32.mrf.mxu1 }
 0x378   : > { %v919_v44 = vsel %vm759_vm3, %v913_v43, -inf }
 0x379   : > { %920 = vmax.xlane.f32.xlu0 %v919_v44  ;;  %v1836_v45 = vpop.f32.mrf.mxu0  ;;  %v1847_v46 = vpop.f32.mrf.mxu1 }
 0x37b   : > { %v916_v47 = vpop.f32.mrf.mxu1 }
 0x37d   : > { %v1848_v48 = vpop.f32.mrf.mxu1 }
 0x37f   : > { %v1024_v49 = vpop.f32.mrf.mxu1 }
 0x380   : > { %v1030_v50 = vsel %vm759_vm3, %v1024_v49, -inf }
 0x381   : > { %v1859_v51 = vpop.f32.mrf.mxu1  ;;  %1031 = vmax.xlane.f32.xlu1 %v1030_v50  ;;  %v2004_v50 = vld [vmem:[%s2326_s16 + $0x8] sm:$0xff]  }
 0x382   : > { %1880 = vmatpush3.bf16.msra.mxu1 %v2004_v50  ;;  %v2005_v51 = vld [vmem:[%s2326_s16] sm:$0xff]  }
 0x383   : > { %v1027_v52 = vpop.f32.mrf.mxu1  ;;  %1881 = vmatprep.subr.bf16.mxu1 %v2134_v9  ;;  %v1769_v50 = vld [vmem:[%s652_s14] ss:$0 sm:$0xff] }
 0x385   : > { %v1860_v53 = vpop.f32.mrf.mxu1 }
 0x386   : > { %1882 = vmatpush3.bf16.msra.mxu1 %v2005_v51 }
 0x387   : > { %v1135_v54 = vpop.f32.mrf.mxu1  ;;  %1895 = vmatprep.subr.bf16.mxu1 %v2134_v9 }
 0x388   : > { %v1141_v55 = vsel %vm759_vm3, %v1135_v54, -inf }
 0x389   : > { %1142 = vmax.xlane.f32.xlu0 %v1141_v55  ;;  %v1871_v56 = vpop.f32.mrf.mxu1 }
 0x38b   : > { %v1138_v57 = vpop.f32.mrf.mxu1 }
 0x38d   : > { %v1872_v58 = vpop.f32.mrf.mxu1 }
 0x3fe   : > { %v808_v59 = vpop.xlane.xlu1 %807 }
 0x3ff   : > { %v809_v60 = vsub.f32 %v800_v39, %v808_v59 }
 0x401   : > { %v810_v61 = vmul.f32 1.442695, %v809_v60 }
 0x402   : > { %v921_v62 = vpop.xlane.xlu0 %920 }
 0x403   : > { %2018 = vpow2.f32 %v810_v61  ;;  %v922_v63 = vsub.f32 %v913_v43, %v921_v62 }
 0x405   : > { %v923_v0 = vmul.f32 1.442695, %v922_v63 }
 0x407   : > { %2020 = vpow2.f32 %v923_v0 }
 0x40a   : > { %v1032_v12 = vpop.xlane.xlu1 %1031 }
 0x40b   : > { %v1033_v13 = vsub.f32 %v1024_v49, %v1032_v12 }
 0x40d   : > { %v1034_v14 = vmul.f32 1.442695, %v1033_v13 }
 0x410   : > { %v2019_v2 = vpop.eup %2018 }
 0x411   : > { %v812_v3 = vsel %vm759_vm3, %v2019_v2, 0.0 }
 0x412   : > { %v1143_v4 = vpop.xlane.xlu0 %1142  ;;  %813 = vadd.xlane.f32.xlu1 %v812_v3 }
 0x413   : > { %v1144_v5 = vsub.f32 %v1135_v54, %v1143_v4 }
 0x414   : > { %v2021_v6 = vpop.eup %2020 }
 0x415   : > { %v1145_v7 = vmul.f32 1.442695, %v1144_v5  ;;  %v925_v8 = vsel %vm759_vm3, %v2021_v6, 0.0 }
 0x416   : > { %926 = vadd.xlane.f32.xlu0 %v925_v8 }
 0x417   : > { %2022 = vpow2.f32 %v1145_v7 }
 0x418   : > { %2024 = vpow2.f32 %v1034_v14 }
 0x423   : > { %818 = vrot.lane.b32.xlu1 %v2390_v23, %s2143_s4 }
 0x424   : > { %v2023_v10 = vpop.eup %2022 }
 0x425   : > { %v1147_v11 = vsel %vm759_vm3, %v2023_v10, 0.0  ;;  %v2025_v15 = vpop.eup %2024 }
 0x426   : > { %1148 = vadd.xlane.f32.xlu0 %v1147_v11  ;;  %v1036_v16 = vsel %vm759_vm3, %v2025_v15, 0.0 }
 0x43c   : > { %931 = vrot.lane.b32.xlu0 %v2390_v23, %s2144_s15 }
 0x447   : > { %1037 = vadd.xlane.f32.xlu1 %v1036_v16 }
 0x458   : > { %1042 = vrot.lane.b32.xlu1 %v2390_v23, %s2145_s25 }
 0x45c   : > { %1153 = vrot.lane.b32.xlu1 %v2390_v23, %s2146_s13 }
 0x49b   : > { %v814_v17 = vpop.xlane.xlu1 %813 }
 0x49c   : > { %2026 = vrcp.f32 %v814_v17 }
 0x49f   : > { %v927_v18 = vpop.xlane.xlu0 %926  ;;  %v819_v19 = vpop.permute.xlu1 %818 }
 0x4a0   : > { %v825_v20 = vsel %vm823_vm4, %v819_v19, 0  ;;  %2028 = vrcp.f32 %v927_v18 }
 0x4a1   : > { %1838 = vmatpush3.bf16.msra.mxu0 %v825_v20  ;;  %v2006_v20 = vld [vmem:[%s2343_s0 + $0x8] sm:$0xff]  }
 0x4a2   : > { %1849 = vmatprep.subr.bf16.mxu0 %v2134_v9 }
 0x4a9   : > { %v2027_v21 = vpop.eup %2026 }
 0x4aa   : > { %v816_v22 = vmul.f32 %v2027_v21, %v2019_v2  ;;  %v2008_v21 = vld [vmem:[%s2353_s19 + $0x38] sm:$0xff]  }
 0x4ac   : > { %v817_v24 = vpack.c.bf16 %v816_v22, %v816_v22  ;;  %v2009_v22 = vld [vmem:[%s2353_s19 + $0x30] sm:$0xff]  }
 0x4ad   : > { %v2029_v25 = vpop.eup %2028 }
 0x4ae   : > { %1840 = vmatmul.mubr.msk.bf16.vlgmr.msra.gmra.mxu0 %vm759_vm3, %v817_v24  ;;  %v929_v23 = vmul.f32 %v2029_v25, %v2021_v6  ;;  %v1759_v6 = vld [vmem:[%s2626_s18] ss:$0 sm:$0xff] }
 0x4af   : > { %v1149_v26 = vpop.xlane.xlu0 %1148  ;;  %1851 = vmatprep.mubr.msk.bf16.mxu0 %vm2135_vm2, %v2134_v9 }
 0x4b0   : > { %v930_v29 = vpack.c.bf16 %v929_v23, %v929_v23 }
 0x4b3   : > { %v932_v27 = vpop.permute.xlu0 %931 }
 0x4b4   : > { %v937_v28 = vsel %vm823_vm4, %v932_v27, 0  ;;  %v1763_v27 = vld [vmem:[%s633_s29] ss:$0 sm:$0xff] }
 0x4b5   : > { %1850 = vmatpush3.bf16.msra.mxu0 %v937_v28 }
 0x4b6   : > { %1861 = vmatprep.subr.bf16.mxu0 %v2134_v9 }
 0x4b8   : > { %1852 = vmatmul.mubr.msk.bf16.vlgmr.msra.gmra.mxu0 %vm759_vm3, %v930_v29  ;;  %v1764_v29 = vld [vmem:[%s2627_s28] ss:$0 sm:$0xff] }
 0x4b9   : > { %1863 = vmatprep.mubr.msk.bf16.mxu0 %vm2135_vm2, %v2134_v9 }
 0x4d0   : > { %v1038_v30 = vpop.xlane.xlu1 %1037 }
 0x4d1   : > { %2030 = vrcp.f32 %v1038_v30 }
 0x4d2   : > { %2032 = vrcp.f32 %v1149_v26 }
 0x4d4   : > { %v1043_v31 = vpop.permute.xlu1 %1042 }
 0x4d5   : > { %v1048_v32 = vsel %vm823_vm4, %v1043_v31, 0 }
 0x4d6   : > { %1862 = vmatpush3.bf16.msra.mxu0 %v1048_v32 }
 0x4d7   : > { %1873 = vmatprep.subr.bf16.mxu0 %v2134_v9 }
 0x4d8   : > { %v1154_v35 = vpop.permute.xlu1 %1153 }
 0x4d9   : > { %v1159_v38 = vsel %vm823_vm4, %v1154_v35, 0  ;;  %v2012_v35 = vld [vmem:[%s2353_s19 + $0x18] sm:$0xff]  }
 0x4de   : > { %v2031_v33 = vpop.eup %2030 }
 0x4df   : > { %v1040_v34 = vmul.f32 %v2031_v33, %v2025_v15  ;;  %v2033_v37 = vpop.eup %2032  ;;  %v2010_v33 = vld [vmem:[%s2353_s19 + $0x28] sm:$0xff]  }
 0x4e0   : > { %v1151_v39 = vmul.f32 %v2033_v37, %v2023_v10  ;;  %v2014_v37 = vld [vmem:[%s2353_s19 + $0x8] sm:$0xff]  }
 0x4e1   : > { %v1041_v36 = vpack.c.bf16 %v1040_v34, %v1040_v34  ;;  %v2011_v34 = vld [vmem:[%s2353_s19 + $0x20] sm:$0xff]  }
 0x4e2   : > { %v1152_v40 = vpack.c.bf16 %v1151_v39, %v1151_v39  ;;  %v1765_v39 = vld [vmem:[%s644_s3] ss:$0 sm:$0xff]  ;;  %s2628_s3 = sld [smem:[#allocation9_spill]] }
 0x4e3   : > { %1864 = vmatmul.mubr.msk.bf16.vlgmr.msra.gmra.mxu0 %vm759_vm3, %v1041_v36  ;;  %v2013_v36 = vld [vmem:[%s2353_s19 + $0x10] sm:$0xff]  }
 0x4e4   : > { %1874 = vmatpush3.bf16.msra.mxu0 %v1159_v38  ;;  %1875 = vmatprep.mubr.msk.bf16.mxu0 %vm2135_vm2, %v2134_v9  ;;  %v2015_v38 = vld [vmem:[%s2353_s19] sm:$0xff]  }
 0x4e5   : > { %1887 = vmatprep.subr.bf16.mxu0 %v2134_v9 }
 0x4e8   : > { %p1778_p1 = scmp.ne.s32.totalorder %s2628_s3, 1 }
 0x4e9   : > { %s2629_s25 = sld [smem:[#allocation22_spill]] (!%p1778_p1) }
 0x4eb   : > { %1876 = vmatmul.mubr.msk.bf16.vlgmr.msra.gmra.mxu0 %vm759_vm3, %v1152_v40 }
 0x4ec   : > { %1891 = vmatprep.mubr.msk.bf16.mxu0 %vm2135_vm2, %v2134_v9  ;;  %1888 = vmatpush3.bf16.msra.mxu0 %v2006_v20 }
 0x4ed   : > { %1889 = vmatprep.subr.bf16.mxu0 %v2134_v9 }
 0x56e   : > { %v861_v41 = vpop.f32.mrf.mxu0 }
 0x56f   : > { %v867_v63 = vpack.c.bf16 %v861_v41, %v861_v41 }
 0x570   : > { %v1841_v42 = vpop.f32.mrf.mxu0 }
 0x572   : > { %v864_v43 = vpop.f32.mrf.mxu0 }
 0x574   : > { %v1842_v44 = vpop.f32.mrf.mxu0 }
 0x578   : > { %v973_v45 = vpop.f32.mrf.mxu0 }
 0x579   : > { %v979_v46 = vpack.c.bf16 %v973_v45, %v973_v45 }
 0x57a   : > { %v1853_v47 = vpop.f32.mrf.mxu0 }
 0x57b   : > { %1203 = vrot.lane.b32.xlu0 %v979_v46, %s2147_s22 }
 0x57c   : > { %v976_v48 = vpop.f32.mrf.mxu0 }
 0x57e   : > { %v1854_v49 = vpop.f32.mrf.mxu0 }
 0x5a3   : > { %v1084_v52 = vpop.f32.mrf.mxu0 }
 0x5a4   : > { %v1090_v53 = vpack.c.bf16 %v1084_v52, %v1084_v52 }
 0x5a5   : > { %v1865_v54 = vpop.f32.mrf.mxu0 }
 0x5a6   : > { %1206 = vrot.lane.b32.xlu1 %v1090_v53, %s2148_s30  ;;  %s2630_s30 = sld [smem:[#allocation23_spill]] (!%p1778_p1) }
 0x5a7   : > { %v1087_v55 = vpop.f32.mrf.mxu0 }
 0x5a9   : > { %v1866_v56 = vpop.f32.mrf.mxu0 }
 0x5ab   : > { %v1195_v57 = vpop.f32.mrf.mxu0 }
 0x5ac   : > { %v1201_v58 = vpack.c.bf16 %v1195_v57, %v1195_v57 }
 0x5ad   : > { %v1877_v59 = vpop.f32.mrf.mxu0 }
 0x5ae   : > { %1209 = vrot.lane.b32.xlu0 %v1201_v58, %s2149_s17 }
 0x5af   : > { %v1198_v60 = vpop.f32.mrf.mxu0 }
 0x5b1   : > { %v1878_v61 = vpop.f32.mrf.mxu0 }
 0x5ed   : > { %v1204_v62 = vpop.permute.xlu0 %1203 }
 0x5ee   : > { %v1213_v2 = vsel %vm759_vm3, %v867_v63, %v1204_v62 }
 0x618   : > { %v1207_v0 = vpop.permute.xlu1 %1206 }
 0x619   : > { %v1216_v3 = vsel %vm1214_vm5, %v1213_v2, %v1207_v0 }
 0x620   : > { %v1210_v4 = vpop.permute.xlu0 %1209 }
 0x621   : > { %v1219_v5 = vsel %vm1217_vm6, %v1216_v3, %v1210_v4 }
 0x622   : > { %1884 = vmatmul.mubr.msk.bf16.vlgmr.msra.gmra.mxu1 %vm664_vm1, %v1219_v5 }
 0x623   : > { %1911 = vmatprep.mubr.msk.bf16.mxu1 %vm2135_vm2, %v2134_v9  ;;  %1896 = vmatpush3.bf16.msra.mxu1 %v2008_v21 }
 0x624   : > { %1897 = vmatprep.subr.bf16.mxu1 %v2134_v9 }
 0x627   : > { %1898 = vmatpush3.bf16.msra.mxu1 %v2009_v22 }
 0x628   : > { %1899 = vmatprep.subr.bf16.mxu1 %v2134_v9 }
 0x62b   : > { %1900 = vmatpush3.bf16.msra.mxu1 %v2010_v33 }
 0x62c   : > { %1901 = vmatprep.subr.bf16.mxu1 %v2134_v9 }
 0x62f   : > { %1902 = vmatpush3.bf16.msra.mxu1 %v2011_v34 }
 0x630   : > { %1903 = vmatprep.subr.bf16.mxu1 %v2134_v9 }
 0x633   : > { %1904 = vmatpush3.bf16.msra.mxu1 %v2012_v35 }
 0x634   : > { %1905 = vmatprep.subr.bf16.mxu1 %v2134_v9 }
 0x637   : > { %1906 = vmatpush3.bf16.msra.mxu1 %v2013_v36 }
 0x638   : > { %1907 = vmatprep.subr.bf16.mxu1 %v2134_v9 }
 0x63b   : > { %1908 = vmatpush3.bf16.msra.mxu1 %v2014_v37 }
 0x63c   : > { %1909 = vmatprep.subr.bf16.mxu1 %v2134_v9 }
 0x63f   : > { %1910 = vmatpush3.bf16.msra.mxu1 %v2015_v38 }
 0x6e2   : > { %v1279_v7 = vpop.f32.mrf.mxu1 }
 0x6e3   : > { %v1280_v8 = vadd.f32 %v1759_v6, %v1279_v7 }
 0x6e4   : > { %v1885_v10 = vpop.f32.mrf.mxu1 }
 0x6e5   : > { %v2462_v11 = vadd.f32 %v1280_v8, %v2361_v1  ;;  %v2007_v1 = vld [vmem:[%s2343_s0] sm:$0xff]  }
 0x6e6   : > { %v1282_v12 = vpop.f32.mrf.mxu1  ;;  %1890 = vmatpush3.bf16.msra.mxu0 %v2007_v1 }
 0x6e7   : > { %v1288_v13 = vsel %vm664_vm1, %v2462_v11, 0.0 }
 0x6e8   : > { %1289 = vadd.xlane.f32.xlu1 %v1288_v13  ;;  %v1886_v14 = vpop.f32.mrf.mxu1 }
 0x771   : > { %v1290_v15 = vpop.xlane.xlu1 %1289 }
 0x772   : > { %v1291_v16 = vmul.f32 0.03125, %v1290_v15 }
 0x774   : > { %v1292_v17 = vsub.f32 %v2462_v11, %v1291_v16 }
 0x776   : > { %v1293_v18 = vmul.f32 %v1292_v17, %v1292_v17 }
 0x778   : > { %v1294_v19 = vsel %vm664_vm1, %v1293_v18, 0.0 }
 0x779   : > { %1295 = vadd.xlane.f32.xlu0 %v1294_v19 }
 0x802   : > { %v1296_v24 = vpop.xlane.xlu0 %1295 }
 0x803   : > { %v1297_v25 = vmul.f32 0.03125, %v1296_v24 }
 0x805   : > { %v1298_v26 = vadd.f32 1e-05, %v1297_v25 }
 0x807   : > { %2034 = vrsqrt.f32 %v1298_v26 }
 0x814   : > { %v2035_v23 = vpop.eup %2034 }
 0x815   : > { %v1300_v28 = vmul.f32 %v2035_v23, %v1292_v17 }
 0x817   : > { %v1307_v30 = vmul.f32 %v1763_v27, %v1300_v28 }
 0x819   : > { %v1314_v31 = vadd.f32 %v1764_v29, %v1307_v30 }
 0x81b   : > { %v1315_v32 = vpack.c.bf16 %v1314_v31, %v1314_v31 }
 0x81d   : > { %1892 = vmatmul.mubr.msk.bf16.vlgmr.msra.gmra.mxu0 %vm664_vm1, %v1315_v32 }
 0x8dd   : > { %v1376_v40 = vpop.f32.mrf.mxu0 }
 0x8de   : > { %v1377_v41 = vadd.f32 %v1765_v39, %v1376_v40 }
 0x8df   : > { %v1893_v42 = vpop.f32.mrf.mxu0 }
 0x8e0   : > { %v1383_v43 = vmul.f32 0.70710677, %v1377_v41  ;;  %v1382_v47 = vmul.f32 0.5, %v1377_v41 }
 0x8e1   : > { %v1379_v44 = vpop.f32.mrf.mxu0 }
 0x8e2   : > { %2036 = verf.f32 %v1383_v43 }
 0x8e3   : > { %v1894_v45 = vpop.f32.mrf.mxu0 }
 0x8ef   : > { %v2037_v46 = vpop.eup %2036 }
 0x8f0   : > { %v1385_v48 = vadd.f32 1.0, %v2037_v46 }
 0x8f2   : > { %v1386_v49 = vmul.f32 %v1385_v48, %v1382_v47 }
 0x8f4   : > { %v1387_v9 = vpack.c.bf16 %v1386_v49, %v1386_v49 }
 0x8f6   : > { %1912 = vmatmul.mubr.bf16.vlgmr.msra.gmra.mxu1 %v1387_v9 }
 0x9b6   : > { %v1493_v51 = vpop.f32.mrf.mxu1 }
 0x9b7   : > { %v1494_v52 = vadd.f32 %v1769_v50, %v1493_v51 }
 0x9b8   : > { %v1913_v53 = vpop.f32.mrf.mxu1  ;;  %1504 = sbr.rel (%p1778_p1) target bundleno = 2802 (0xaf2), region = 84 }
 0x9b9   : > { %v1499_v54 = vadd.f32 %v1494_v52, %v2462_v11 }
 0x9ba   : > { %v1496_v55 = vpop.f32.mrf.mxu1 }
 0x9bb   : > { %1500 = vst.msk [vmem:[#allocation2] sm:$0xff] %vm664_vm1, %v1499_v54 }
 0x9bc   : > { %v1914_v56 = vpop.f32.mrf.mxu1 }
 0x9bd   : > { %v1507_v57 = vsel %vm664_vm1, %v1499_v54, 0.0  ;;  %v1779_v4 = vld [vmem:[%s2629_s25] ss:$0 sm:$0xff] }
 0x9be   : > { %1508 = vadd.xlane.f32.xlu0 %v1507_v57  ;;  %v1780_v6 = vld [vmem:[%s2630_s30] ss:$0 sm:$0xff] }
 0xa47   : > { %v1509_v58 = vpop.xlane.xlu0 %1508 }
 0xa48   : > { %v1510_v59 = vmul.f32 0.03125, %v1509_v58 }
 0xa4a   : > { %v1511_v60 = vsub.f32 %v1499_v54, %v1510_v59 }
 0xa4c   : > { %v1512_v61 = vmul.f32 %v1511_v60, %v1511_v60 }
 0xa4e   : > { %v1513_v62 = vsel %vm664_vm1, %v1512_v61, 0.0 }
 0xa4f   : > { %1514 = vadd.xlane.f32.xlu0 %v1513_v62 }
 0xad8   : > { %v1515_v63 = vpop.xlane.xlu0 %1514 }
 0xad9   : > { %v1516_v0 = vmul.f32 0.03125, %v1515_v63 }
 0xadb   : > { %v1517_v2 = vadd.f32 1e-05, %v1516_v0 }
 0xadd   : > { %2038 = vrsqrt.f32 %v1517_v2 }
 0xaea   : > { %v2039_v3 = vpop.eup %2038 }
 0xaeb   : > { %v1519_v5 = vmul.f32 %v2039_v3, %v1511_v60 }
 0xaed   : > { %v1526_v7 = vmul.f32 %v1779_v4, %v1519_v5 }
 0xaef   : > { %v1533_v8 = vadd.f32 %v1780_v6, %v1526_v7 }
 0xaf1   : > { %1534 = vst.msk [vmem:[%s607_s20] sm:$0xff] %vm664_vm1, %v1533_v8 }
 0xaf2 PF: > { %s2631_s17 = sld [smem:[#allocation10_spill]]  ;;  %s1549_s28 = sshll.u32 %s607_s20, 4  ;;  %s1550_s28 = int_to_ptr.vmem [resolvable:$true] %s1549_s28 }
 0xaf3   : > { %s2632_s16 = sld [smem:[#allocation7_spill]]  ;;  %s2040_s19 = scalar_lea.vmem %s1550_s28, 128 }
 0xaf4   : > { %s2634_s27 = sld [smem:[#allocation24_spill]]  ;;  %p2041_p2 = scmp.ne.s32.totalorder %s1550_s28, %s2040_s19 }
 0xaf5   : > { %s2150_s15 = smov [#allocation3]  }
 0xaf6   : > { %p2042_p4 = pnand %p2041_p2, %p2275_p3  ;;  %s2044_s3 = sshll.u32 %s2150_s15, 4  ;;  %s2045_s3 = int_to_ptr.vmem [resolvable:$false] %s2044_s3 }
 0xaf7   : > { %s2046_s26 = scalar_lea.vmem %s2045_s3, 256  ;;  %p2047_p6 = scmp.lt.s32.totalorder %s1550_s28, %s2045_s3 }
 0xaf8   : > { %s1782_s18 = sshll.u32 %s2631_s17, 7  ;;  %p2043_p5 = pneg %p2042_p4 }
 0xaf9   : > { %s2635_s29 = sand.u32 1, %s2632_s16   ;;  %p2048_p7 = scmp.lt.s32.totalorder %s2046_s26, %s2040_s19 }
 0xafa   : > { %s1547_s21 = scalar_lea.hbm %s2634_s27, %s1782_s18  ;;  %s1536_s4 = scalar_lea.sflag [#allocation4], %s2635_s29 }
 0xafb   : > { %p2049_p8 = por %p2048_p7, %p2047_p6 }
 0xafd   : > { %p2050_p10 = pnand %p2049_p8, %p2043_p5 }
 0xaff   : > { %2053 = shalt.err (!%p2050_p10)
}
 0xb00   : > { %s2054_s14 = scalar_lea.hbm %s1547_s21, 128  ;;  %s2058_s25 = scalar_lea.hbm %s2634_s27, 256 }
 0xb01   : > { %p2055_p11 = scmp.ne.s32.totalorder %s1547_s21, %s2054_s14  ;;  %p2059_p0 = scmp.lt.s32.totalorder %s1547_s21, %s2634_s27 }
 0xb02   : > { %p2060_p1 = scmp.lt.s32.totalorder %s2058_s25, %s2054_s14 }
 0xb03   : > { %p2056_p12 = pnand %p2055_p11, %p2275_p3 }
 0xb04   : > { %p2061_p2 = por %p2060_p1, %p2059_p0 }
 0xb05   : > { %p2057_p13 = pneg %p2056_p12 }
 0xb07   : > { %p2062_p4 = pnand %p2061_p2, %p2057_p13 }
 0xb09   : > { %2065 = shalt.err (!%p2062_p4)
}
 0xb0a   : > { %1915 = dma.vmem_to_hbm [thread:$0]  (%p2275_p3), %s1550_s28, 128, %s1547_s21, %s1536_s4  }
 0xb0b PF: > { %s2636_s30 = sld [smem:[#allocation13_spill]] }
 0xb0c   : > { %s2637_s17 = sld [smem:[#allocation6_spill]] }
 0xb11   : > { %p1921_p5 = scmp.ge.s32.totalorder %s2636_s30, 2 }
 0xb12   : > { %s1561_s18 = sand.u32 1, %s2637_s17  }
 0xb13   : > { %p1918_p6 = pnand %p1921_p5, %p2285_p9  ;;  %s1562_s0 = scalar_lea.sflag [#allocation4], %s1561_s18 }
 0xb15   : > { %p1919_p7 = pneg %p1918_p6 }
 0xb17   : > { %2099 = dma.done.wait (%p1919_p7), %s1562_s0, 128  }
 0xb18   : > { %2101 = vsyncadd (%p1919_p7), %s1562_s0, 4294967168  ;;  %s27_s20 = sadd.s32 1, %s2636_s30   ;;  %s2639_s29 = sld [smem:[#allocation7_spill]] }
 0xb19   : > { %p24_p8 = scmp.ge.s32.totalorder %s27_s20, 6   ;;  %s2640_s30 = sld [smem:[#allocation8_spill]] }
 0xb1a   : > { %s2641_s15 = sld [smem:[#allocation18_spill]] }
 0xb1b   : > { %s2642_s16 = sld [smem:[#allocation11_spill]]  ;;  %26 = sbr.rel (!%p24_p8) target bundleno = 12 (0xc), region = 152 }
 0xb1c   : > { %s2643_s17 = sld [smem:[#allocation12_spill]] }
 0xb1d   : > { %s2644_s18 = sld [smem:[#allocation14_spill]] }
 0xb1e   : > { %s2645_s19 = sld [smem:[#allocation16_spill]] }
 0xb20   :  { %1567 = vsyncpa [#allocation4], 1 }
 0xb21   :  { %1569 = vsyncpa [#allocation4 + $0x1], 1 }

</bundles_post_ra>
